<compile_context>
chip_gen: v6e
topology: v6e:2x2x1
jax: 0.10.0
libtpu: 0.0.40
codegen_flags: <defaults>
</compile_context>

<pallas_src>
import numpy as np
import jax
import jax.numpy as jnp
from jax.experimental import pallas as pl
from jax.experimental.pallas import tpu as pltpu

# ----------------------------- configuration -------------------------------
BATCH = 2
C_IN, IMG_H, IMG_W = 4, 16, 16          # img_dim
ENC_LAYERS, DEC_LAYERS = 2, 2
Z_DIM = 8
INIT_FILTERS = 8
NF1 = INIT_FILTERS                       # 8  (encoder conv1 filters)
NF2 = INIT_FILTERS * 2                   # 16 (encoder conv2 filters)
DEC_F = INIT_FILTERS * 2 ** (ENC_LAYERS - 1)   # 16 (decoder seed filters)
S1 = IMG_H // 2                          # 8  spatial after conv1 / deconv1 out
S2 = IMG_H // 4                          # 4  spatial after conv2 / decoder seed
FLAT = NF2 * S2 * S2                     # 256

# In-kernel activation layout: 2-D arrays with rows = (spatial_row, batch) and
# lanes = (spatial_col, channel).  Lane widths per stage (all 64 here):
LANE_X = IMG_W * C_IN                    # input rows
LANE_G1 = S1 * NF1                       # conv1 output rows
LANE_G2 = S2 * NF2                       # conv2 output rows
LANE_D = S2 * DEC_F                      # decoder-fc rows (per seed row)
LANE_G3 = S1 * NF1                       # deconv1 output rows

C1_SHAPE = (S1 * BATCH, 3 * LANE_X)      # (16, 192)
C2_SHAPE = (S2 * BATCH, 3 * LANE_G1)     # (8, 192)
C3_SHAPE = (S1 * BATCH, 3 * LANE_D)      # (16, 192)
C4_SHAPE = (IMG_H * BATCH, 3 * LANE_G3)  # (32, 192)


# ----------------------- banded conv weights (prep time) --------------------
def _enc_band(w, win, ow):
    """3x3 / stride-2 / pad-1 conv -> GEMM weight.

    Rows are (kh, in_col, cin), cols are (out_col, cout); the W-axis window,
    stride and zero padding are folded into the band structure."""
    kh, kw, cin, cout = w.shape
    sel = np.zeros((kw, win, ow), np.float32)
    for ox in range(ow):
        for dj in range(kw):
            wi = 2 * ox + dj - 1
            if 0 <= wi < win:
                sel[dj, wi, ox] = 1.0
    band = jnp.einsum("jwo,ijcd->iwcod", sel, w.astype(jnp.float32))
    return band.reshape(kh * win * cin, ow * cout)


def _dec_band(w, win, ow):
    """3x3 / stride-2 / pad-1 / outpad-1 transposed conv -> GEMM weight.

    Rows are (kh, in_col, cin), cols are (out_col, cout); the W-axis
    zero-insertion upsample + cropping are folded into the band."""
    kh, kw, cin, cout = w.shape
    sel = np.zeros((kw, win, ow), np.float32)
    for ox in range(ow):
        for ix in range(win):
            k = ox + 1 - 2 * ix           # out = 2*in + k - pad
            if 0 <= k < kw:
                sel[k, ix, ox] = 1.0
    band = jnp.einsum("kxo,akcd->axcod", sel, w.astype(jnp.float32))
    return band.reshape(kh * win * cin, ow * cout)


# ------------------------------ the fused kernel ----------------------------
def _lvae_kernel(
    x_ref, eps_ref,
    band1_ref, bias1_ref, band2_ref, bias2_ref,
    whead_ref, bhead_ref, wdfc_ref, bdfc_ref,
    band3_ref, bias3_ref, band4_ref, bias4_ref,
    xhat_ref, z_ref, mh_ref, covar_ref, u_ref, v_ref,
    c1, c2, c3, c4,
):
    B = BATCH

    def relu(x):
        return jnp.maximum(x, 0.0)

    def gemm(cols_ref, w_ref, b_ref):
        acc = jnp.dot(cols_ref[...], w_ref[...],
                      preferred_element_type=jnp.float32)
        return acc + b_ref[...]

    def conv_cols(cols_ref, read_row, n_out, n_in, lane_w):
        """im2col along H for a stride-2 / pad-1 / k=3 conv (W is in the band)."""
        cols_ref[...] = jnp.zeros(cols_ref.shape, jnp.float32)
        for oy in range(n_out):
            for di in range(3):
                h = 2 * oy + di - 1
                if 0 <= h < n_in:
                    cols_ref[oy * B:(oy + 1) * B,
                             di * lane_w:(di + 1) * lane_w] = read_row(h)

    def deconv_cols(cols_ref, read_row, n_out, n_in, lane_w):
        """im2col along H for a stride-2 transposed conv (zero-insert folded in)."""
        cols_ref[...] = jnp.zeros(cols_ref.shape, jnp.float32)
        for oy in range(n_out):
            for di in range(3):
                r = oy + di
                if r % 2 == 1 and (r - 1) // 2 < n_in:
                    cols_ref[oy * B:(oy + 1) * B,
                             di * lane_w:(di + 1) * lane_w] = read_row((r - 1) // 2)

    # ------------------------------ H_Encoder -------------------------------
    conv_cols(c1, lambda h: x_ref[h * B:(h + 1) * B, :], S1, IMG_H, LANE_X)
    g1 = relu(gemm(c1, band1_ref, bias1_ref))          # (S1*B, S1*NF1)

    conv_cols(c2, lambda h: g1[h * B:(h + 1) * B, :], S2, S1, LANE_G1)
    g2 = relu(gemm(c2, band2_ref, bias2_ref))          # (S2*B, S2*NF2)

    # fused mean | var heads: hflat @ Whead done as a sum over spatial-row blocks
    head = bhead_ref[...]                              # (1, 2*Z)
    for oy in range(S2):
        head = head + jnp.dot(g2[oy * B:(oy + 1) * B, :],
                              whead_ref[oy * LANE_G2:(oy + 1) * LANE_G2, :],
                              preferred_element_type=jnp.float32)
    mean_e = head[:, :Z_DIM]                           # (B, Z)
    pre = head[:, Z_DIM:]
    var = jnp.maximum(pre, 0.0) + jnp.log(1.0 + jnp.exp(-jnp.abs(pre)))  # softplus

    # ------------- H_Embedding: wrapped normal on the Lorentz manifold -------
    eps = eps_ref[...]
    v = jnp.sqrt(var) * eps                            # tangent sample at origin

    # expmap0 (K = 1) of the Euclidean mean; stable sinh(r)/r for small r.
    r2 = jnp.sum(mean_e * mean_e, axis=-1, keepdims=True)
    r = jnp.sqrt(r2)
    er = jnp.exp(r)
    ier = 1.0 / er
    cosh_r = 0.5 * (er + ier)
    sinh_over_r = jnp.where(r < 1e-4, 1.0 + r2 / 6.0,
                            0.5 * (er - ier) / jnp.maximum(r, 1e-8))
    mh0 = cosh_r                                       # (B, 1) time component
    mh_rest = sinh_over_r * mean_e                     # (B, Z) space components

    # parallel transport of (0, v) from the origin to mean_H.
    lp = jnp.sum(mh_rest * v, axis=-1, keepdims=True)
    u0 = lp
    u_rest = v + (lp / (1.0 + mh0)) * mh_rest

    # exponential map at mean_H.
    un2 = jnp.maximum(jnp.sum(u_rest * u_rest, axis=-1, keepdims=True) - u0 * u0,
                      0.0)
    un = jnp.sqrt(un2)
    eu = jnp.exp(un)
    ieu = 1.0 / eu
    cosh_u = 0.5 * (eu + ieu)
    sinh_over_u = jnp.where(un < 1e-4, 1.0 + un2 / 6.0,
                            0.5 * (eu - ieu) / jnp.maximum(un, 1e-8))
    z0 = cosh_u * mh0 + sinh_over_u * u0
    z_rest = cosh_u * mh_rest + sinh_over_u * u_rest

    z_ref[:, 0:1] = z0
    z_ref[:, 1:] = z_rest
    mh_ref[:, 0:1] = mh0
    mh_ref[:, 1:] = mh_rest
    u_ref[:, 0:1] = u0
    u_ref[:, 1:] = u_rest
    v_ref[...] = v
    covar_ref[...] = var

    # ------------------------------ H_Decoder -------------------------------
    # logmap0
    z0c = jnp.maximum(z0, 1.0 + 1e-7)
    zn = jnp.sqrt(jnp.maximum(jnp.sum(z_rest * z_rest, axis=-1, keepdims=True),
                              1e-12))
    dist = jnp.log(z0c + jnp.sqrt(z0c * z0c - 1.0))    # arccosh(z0)
    t = (dist / zn) * z_rest                           # (B, Z)

    d = relu(jnp.dot(t, wdfc_ref[...], preferred_element_type=jnp.float32)
             + bdfc_ref[...])                          # (B, S2*S2*DEC_F)

    deconv_cols(c3, lambda iy: d[:, iy * LANE_D:(iy + 1) * LANE_D],
                S1, S2, LANE_D)
    g3 = relu(gemm(c3, band3_ref, bias3_ref))          # (S1*B, S1*NF1)

    deconv_cols(c4, lambda iy: g3[iy * B:(iy + 1) * B, :],
                IMG_H, S1, LANE_G3)
    g4 = gemm(c4, band4_ref, bias4_ref)                # (IMG_H*B, IMG_W*C_IN)
    xhat_ref[...] = 1.0 / (1.0 + jnp.exp(-g4))         # sigmoid


def _lvae_pallas(x_rows, eps, band1, bias1, band2, bias2, whead, bhead,
                 wdfc, bdfc, band3, bias3, band4, bias4):
    ins = (x_rows, eps, band1, bias1, band2, bias2, whead, bhead,
           wdfc, bdfc, band3, bias3, band4, bias4)

    def spec(a):
        return pl.BlockSpec(a.shape, lambda i: (0, 0))

    out_shapes = (
        jax.ShapeDtypeStruct((IMG_H * BATCH, IMG_W * C_IN), jnp.float32),  # x_hat
        jax.ShapeDtypeStruct((BATCH, Z_DIM + 1), jnp.float32),             # z
        jax.ShapeDtypeStruct((BATCH, Z_DIM + 1), jnp.float32),             # mean_H
        jax.ShapeDtypeStruct((BATCH, Z_DIM), jnp.float32),                 # covar
        jax.ShapeDtypeStruct((BATCH, Z_DIM + 1), jnp.float32),             # u
        jax.ShapeDtypeStruct((BATCH, Z_DIM), jnp.float32),                 # v
    )
    out_specs = tuple(pl.BlockSpec(s.shape, lambda i: (0, 0)) for s in out_shapes)
    scratch = [
        pltpu.VMEM(C1_SHAPE, jnp.float32),
        pltpu.VMEM(C2_SHAPE, jnp.float32),
        pltpu.VMEM(C3_SHAPE, jnp.float32),
        pltpu.VMEM(C4_SHAPE, jnp.float32),
    ]
    return pl.pallas_call(
        _lvae_kernel,
        out_shape=out_shapes,
        grid=(1,),
        in_specs=[spec(a) for a in ins],
        out_specs=out_specs,
        scratch_shapes=scratch,
    )(*ins)


# --------------------------------- params -----------------------------------
def init_params(key):
    ks = jax.random.split(key, 8)
    s = 0.05
    n = lambda k, shape: (s * jax.random.normal(k, shape)).astype(jnp.float32)
    z = lambda shape: jnp.zeros(shape, jnp.float32)
    return {
        "enc_w1": n(ks[0], (3, 3, C_IN, NF1)), "enc_b1": z((NF1,)),
        "enc_w2": n(ks[1], (3, 3, NF1, NF2)), "enc_b2": z((NF2,)),
        "fc_mean_w": n(ks[2], (FLAT, Z_DIM)), "fc_mean_b": z((Z_DIM,)),
        "fc_var_w": n(ks[3], (FLAT, Z_DIM)), "fc_var_b": z((Z_DIM,)),
        "dec_fc_w": n(ks[4], (Z_DIM, DEC_F * S2 * S2)),
        "dec_fc_b": z((DEC_F * S2 * S2,)),
        "dec_w1": n(ks[5], (3, 3, DEC_F, NF1)), "dec_b1": z((NF1,)),
        "dec_w2": n(ks[6], (3, 3, NF1, C_IN)), "dec_b2": z((C_IN,)),
    }


def prepare_kernel_params(p):
    """One-time transformation of module params into kernel-ready (banded) form."""
    band1 = _enc_band(p["enc_w1"], IMG_W, S1)
    bias1 = jnp.tile(p["enc_b1"], S1).reshape(1, -1)
    band2 = _enc_band(p["enc_w2"], S1, S2)
    bias2 = jnp.tile(p["enc_b2"], S2).reshape(1, -1)
    whead = jnp.concatenate([p["fc_mean_w"], p["fc_var_w"]], axis=1)
    bhead = jnp.concatenate([p["fc_mean_b"], p["fc_var_b"]]).reshape(1, -1)
    wdfc = p["dec_fc_w"]
    bdfc = p["dec_fc_b"].reshape(1, -1)
    band3 = _dec_band(p["dec_w1"], S2, S1)
    bias3 = jnp.tile(p["dec_b1"], S1).reshape(1, -1)
    band4 = _dec_band(p["dec_w2"], S1, IMG_W)
    bias4 = jnp.tile(p["dec_b2"], IMG_W).reshape(1, -1)
    return (band1, bias1, band2, bias2, whead, bhead, wdfc, bdfc,
            band3, bias3, band4, bias4)


# --------------------------------- forward ----------------------------------
def lvae_forward(kparams, x_nchw, eps):
    """Returns (x_hat, z, mean_H, covar, u, v) like LVAE.forward."""
    # NCHW -> kernel row layout: rows = (h, b), lanes = (w, c).
    x_rows = jnp.transpose(x_nchw.astype(jnp.float32), (2, 0, 3, 1))
    x_rows = x_rows.reshape(IMG_H * BATCH, IMG_W * C_IN)

    xr, z, mean_H, covar, u, v = _lvae_pallas(x_rows, eps.astype(jnp.float32),
                                              *kparams)

    # kernel row layout -> NCHW.
    x_hat = jnp.transpose(xr.reshape(IMG_H, BATCH, IMG_W, C_IN), (1, 3, 0, 2))
    return x_hat, z, mean_H, covar, u, v


# ----------------------------------- main ------------------------------------
if __name__ == "__main__":
    key = jax.random.PRNGKey(0)
    k_param, k_x, k_eps = jax.random.split(key, 3)

    params = init_params(k_param)
    kparams = prepare_kernel_params(params)          # one-time weight packing

    x = jax.random.normal(k_x, (BATCH, C_IN, IMG_H, IMG_W), jnp.float32)
    eps = jax.random.normal(k_eps, (BATCH, Z_DIM), jnp.float32)

    fwd = jax.jit(lvae_forward)
    outputs = jax.block_until_ready(fwd(kparams, x, eps))

    x_hat, z, mean_H, covar, u, v = outputs
    assert x_hat.shape == (BATCH, C_IN, IMG_H, IMG_W)
    assert z.shape == (BATCH, Z_DIM + 1) and mean_H.shape == (BATCH, Z_DIM + 1)
    assert covar.shape == (BATCH, Z_DIM) and u.shape == (BATCH, Z_DIM + 1)
    assert v.shape == (BATCH, Z_DIM)
    assert bool(jnp.all(jnp.isfinite(x_hat))) and bool(jnp.all(jnp.isfinite(z)))
    print("KERNEL_OK")
</pallas_src>

<mosaic_0001>
module attributes {stable_mosaic.version = 11 : i64} {
  func.func @_lvae_kernel(%arg0: i32, %arg1: memref<32x64xf32, #tpu.memory_space<vmem>>, %arg2: memref<2x8xf32, #tpu.memory_space<vmem>>, %arg3: memref<192x64xf32, #tpu.memory_space<vmem>>, %arg4: memref<1x64xf32, #tpu.memory_space<vmem>>, %arg5: memref<192x64xf32, #tpu.memory_space<vmem>>, %arg6: memref<1x64xf32, #tpu.memory_space<vmem>>, %arg7: memref<256x16xf32, #tpu.memory_space<vmem>>, %arg8: memref<1x16xf32, #tpu.memory_space<vmem>>, %arg9: memref<8x256xf32, #tpu.memory_space<vmem>>, %arg10: memref<1x256xf32, #tpu.memory_space<vmem>>, %arg11: memref<192x64xf32, #tpu.memory_space<vmem>>, %arg12: memref<1x64xf32, #tpu.memory_space<vmem>>, %arg13: memref<192x64xf32, #tpu.memory_space<vmem>>, %arg14: memref<1x64xf32, #tpu.memory_space<vmem>>, %arg15: memref<32x64xf32, #tpu.memory_space<vmem>>, %arg16: memref<2x9xf32, #tpu.memory_space<vmem>>, %arg17: memref<2x9xf32, #tpu.memory_space<vmem>>, %arg18: memref<2x8xf32, #tpu.memory_space<vmem>>, %arg19: memref<2x9xf32, #tpu.memory_space<vmem>>, %arg20: memref<2x8xf32, #tpu.memory_space<vmem>>, %arg21: memref<16x192xf32, #tpu.memory_space<vmem>>, %arg22: memref<8x192xf32, #tpu.memory_space<vmem>>, %arg23: memref<16x192xf32, #tpu.memory_space<vmem>>, %arg24: memref<32x192xf32, #tpu.memory_space<vmem>>) attributes {dimension_semantics = [#tpu.dimension_semantics<arbitrary>], iteration_bounds = array<i64: 1>, scalar_prefetch = 0 : i64, scratch_operands = 4 : i64, tpu.core_type = #tpu.core_type<tc>, window_params = [{pipeline_mode = #tpu.pipeline_mode<synchronous>, transform_indices = @transform_0, window_bounds = array<i64: 32, 64>}, {pipeline_mode = #tpu.pipeline_mode<synchronous>, transform_indices = @transform_1, window_bounds = array<i64: 2, 8>}, {pipeline_mode = #tpu.pipeline_mode<synchronous>, transform_indices = @transform_2, window_bounds = array<i64: 192, 64>}, {pipeline_mode = #tpu.pipeline_mode<synchronous>, transform_indices = @transform_3, window_bounds = array<i64: 1, 64>}, {pipeline_mode = #tpu.pipeline_mode<synchronous>, transform_indices = @transform_4, window_bounds = array<i64: 192, 64>}, {pipeline_mode = #tpu.pipeline_mode<synchronous>, transform_indices = @transform_5, window_bounds = array<i64: 1, 64>}, {pipeline_mode = #tpu.pipeline_mode<synchronous>, transform_indices = @transform_6, window_bounds = array<i64: 256, 16>}, {pipeline_mode = #tpu.pipeline_mode<synchronous>, transform_indices = @transform_7, window_bounds = array<i64: 1, 16>}, {pipeline_mode = #tpu.pipeline_mode<synchronous>, transform_indices = @transform_8, window_bounds = array<i64: 8, 256>}, {pipeline_mode = #tpu.pipeline_mode<synchronous>, transform_indices = @transform_9, window_bounds = array<i64: 1, 256>}, {pipeline_mode = #tpu.pipeline_mode<synchronous>, transform_indices = @transform_10, window_bounds = array<i64: 192, 64>}, {pipeline_mode = #tpu.pipeline_mode<synchronous>, transform_indices = @transform_11, window_bounds = array<i64: 1, 64>}, {pipeline_mode = #tpu.pipeline_mode<synchronous>, transform_indices = @transform_12, window_bounds = array<i64: 192, 64>}, {pipeline_mode = #tpu.pipeline_mode<synchronous>, transform_indices = @transform_13, window_bounds = array<i64: 1, 64>}, {pipeline_mode = #tpu.pipeline_mode<synchronous>, transform_indices = @transform_14, window_bounds = array<i64: 32, 64>}, {pipeline_mode = #tpu.pipeline_mode<synchronous>, transform_indices = @transform_15, window_bounds = array<i64: 2, 9>}, {pipeline_mode = #tpu.pipeline_mode<synchronous>, transform_indices = @transform_16, window_bounds = array<i64: 2, 9>}, {pipeline_mode = #tpu.pipeline_mode<synchronous>, transform_indices = @transform_17, window_bounds = array<i64: 2, 8>}, {pipeline_mode = #tpu.pipeline_mode<synchronous>, transform_indices = @transform_18, window_bounds = array<i64: 2, 9>}, {pipeline_mode = #tpu.pipeline_mode<synchronous>, transform_indices = @transform_19, window_bounds = array<i64: 2, 8>}]} {
    %cst = arith.constant 0.000000e+00 : f32
    %0 = vector.broadcast %cst : f32 to vector<16x192xf32>
    %c0 = arith.constant 0 : index
    %c0_0 = arith.constant 0 : index
    %1 = vector.load %arg21[%c0, %c0_0] : memref<16x192xf32, #tpu.memory_space<vmem>>, vector<16x192xf32>
    tpu.vector_store %arg21[%c0, %c0_0], %0 {strides = array<i32>} : memref<16x192xf32, #tpu.memory_space<vmem>>, vector<16x192xf32>,
    %c0_1 = arith.constant 0 : index
    %c0_2 = arith.constant 0 : index
    %2 = vector.load %arg1[%c0_1, %c0_2] : memref<32x64xf32, #tpu.memory_space<vmem>>, vector<2x64xf32>
    %c0_3 = arith.constant 0 : index
    %c64 = arith.constant 64 : index
    %3 = vector.load %arg21[%c0_3, %c64] : memref<16x192xf32, #tpu.memory_space<vmem>>, vector<2x64xf32>
    tpu.vector_store %arg21[%c0_3, %c64], %2 {strides = array<i32>} : memref<16x192xf32, #tpu.memory_space<vmem>>, vector<2x64xf32>,
    %c2 = arith.constant 2 : index
    %c0_4 = arith.constant 0 : index
    %4 = vector.load %arg1[%c2, %c0_4] : memref<32x64xf32, #tpu.memory_space<vmem>>, vector<2x64xf32>
    %c0_5 = arith.constant 0 : index
    %c128 = arith.constant 128 : index
    %5 = vector.load %arg21[%c0_5, %c128] : memref<16x192xf32, #tpu.memory_space<vmem>>, vector<2x64xf32>
    tpu.vector_store %arg21[%c0_5, %c128], %4 {strides = array<i32>} : memref<16x192xf32, #tpu.memory_space<vmem>>, vector<2x64xf32>,
    %c2_6 = arith.constant 2 : index
    %c0_7 = arith.constant 0 : index
    %6 = vector.load %arg1[%c2_6, %c0_7] : memref<32x64xf32, #tpu.memory_space<vmem>>, vector<2x64xf32>
    %c2_8 = arith.constant 2 : index
    %c0_9 = arith.constant 0 : index
    %7 = vector.load %arg21[%c2_8, %c0_9] : memref<16x192xf32, #tpu.memory_space<vmem>>, vector<2x64xf32>
    tpu.vector_store %arg21[%c2_8, %c0_9], %6 {strides = array<i32>} : memref<16x192xf32, #tpu.memory_space<vmem>>, vector<2x64xf32>,
    %c4 = arith.constant 4 : index
    %c0_10 = arith.constant 0 : index
    %8 = vector.load %arg1[%c4, %c0_10] : memref<32x64xf32, #tpu.memory_space<vmem>>, vector<2x64xf32>
    %c2_11 = arith.constant 2 : index
    %c64_12 = arith.constant 64 : index
    %9 = vector.load %arg21[%c2_11, %c64_12] : memref<16x192xf32, #tpu.memory_space<vmem>>, vector<2x64xf32>
    tpu.vector_store %arg21[%c2_11, %c64_12], %8 {strides = array<i32>} : memref<16x192xf32, #tpu.memory_space<vmem>>, vector<2x64xf32>,
    %c6 = arith.constant 6 : index
    %c0_13 = arith.constant 0 : index
    %10 = vector.load %arg1[%c6, %c0_13] : memref<32x64xf32, #tpu.memory_space<vmem>>, vector<2x64xf32>
    %c2_14 = arith.constant 2 : index
    %c128_15 = arith.constant 128 : index
    %11 = vector.load %arg21[%c2_14, %c128_15] : memref<16x192xf32, #tpu.memory_space<vmem>>, vector<2x64xf32>
    tpu.vector_store %arg21[%c2_14, %c128_15], %10 {strides = array<i32>} : memref<16x192xf32, #tpu.memory_space<vmem>>, vector<2x64xf32>,
    %c6_16 = arith.constant 6 : index
    %c0_17 = arith.constant 0 : index
    %12 = vector.load %arg1[%c6_16, %c0_17] : memref<32x64xf32, #tpu.memory_space<vmem>>, vector<2x64xf32>
    %c4_18 = arith.constant 4 : index
    %c0_19 = arith.constant 0 : index
    %13 = vector.load %arg21[%c4_18, %c0_19] : memref<16x192xf32, #tpu.memory_space<vmem>>, vector<2x64xf32>
    tpu.vector_store %arg21[%c4_18, %c0_19], %12 {strides = array<i32>} : memref<16x192xf32, #tpu.memory_space<vmem>>, vector<2x64xf32>,
    %c8 = arith.constant 8 : index
    %c0_20 = arith.constant 0 : index
    %14 = vector.load %arg1[%c8, %c0_20] : memref<32x64xf32, #tpu.memory_space<vmem>>, vector<2x64xf32>
    %c4_21 = arith.constant 4 : index
    %c64_22 = arith.constant 64 : index
    %15 = vector.load %arg21[%c4_21, %c64_22] : memref<16x192xf32, #tpu.memory_space<vmem>>, vector<2x64xf32>
    tpu.vector_store %arg21[%c4_21, %c64_22], %14 {strides = array<i32>} : memref<16x192xf32, #tpu.memory_space<vmem>>, vector<2x64xf32>,
    %c10 = arith.constant 10 : index
    %c0_23 = arith.constant 0 : index
    %16 = vector.load %arg1[%c10, %c0_23] : memref<32x64xf32, #tpu.memory_space<vmem>>, vector<2x64xf32>
    %c4_24 = arith.constant 4 : index
    %c128_25 = arith.constant 128 : index
    %17 = vector.load %arg21[%c4_24, %c128_25] : memref<16x192xf32, #tpu.memory_space<vmem>>, vector<2x64xf32>
    tpu.vector_store %arg21[%c4_24, %c128_25], %16 {strides = array<i32>} : memref<16x192xf32, #tpu.memory_space<vmem>>, vector<2x64xf32>,
    %c10_26 = arith.constant 10 : index
    %c0_27 = arith.constant 0 : index
    %18 = vector.load %arg1[%c10_26, %c0_27] : memref<32x64xf32, #tpu.memory_space<vmem>>, vector<2x64xf32>
    %c6_28 = arith.constant 6 : index
    %c0_29 = arith.constant 0 : index
    %19 = vector.load %arg21[%c6_28, %c0_29] : memref<16x192xf32, #tpu.memory_space<vmem>>, vector<2x64xf32>
    tpu.vector_store %arg21[%c6_28, %c0_29], %18 {strides = array<i32>} : memref<16x192xf32, #tpu.memory_space<vmem>>, vector<2x64xf32>,
    %c12 = arith.constant 12 : index
    %c0_30 = arith.constant 0 : index
    %20 = vector.load %arg1[%c12, %c0_30] : memref<32x64xf32, #tpu.memory_space<vmem>>, vector<2x64xf32>
    %c6_31 = arith.constant 6 : index
    %c64_32 = arith.constant 64 : index
    %21 = vector.load %arg21[%c6_31, %c64_32] : memref<16x192xf32, #tpu.memory_space<vmem>>, vector<2x64xf32>
    tpu.vector_store %arg21[%c6_31, %c64_32], %20 {strides = array<i32>} : memref<16x192xf32, #tpu.memory_space<vmem>>, vector<2x64xf32>,
    %c14 = arith.constant 14 : index
    %c0_33 = arith.constant 0 : index
    %22 = vector.load %arg1[%c14, %c0_33] : memref<32x64xf32, #tpu.memory_space<vmem>>, vector<2x64xf32>
    %c6_34 = arith.constant 6 : index
    %c128_35 = arith.constant 128 : index
    %23 = vector.load %arg21[%c6_34, %c128_35] : memref<16x192xf32, #tpu.memory_space<vmem>>, vector<2x64xf32>
    tpu.vector_store %arg21[%c6_34, %c128_35], %22 {strides = array<i32>} : memref<16x192xf32, #tpu.memory_space<vmem>>, vector<2x64xf32>,
    %c14_36 = arith.constant 14 : index
    %c0_37 = arith.constant 0 : index
    %24 = vector.load %arg1[%c14_36, %c0_37] : memref<32x64xf32, #tpu.memory_space<vmem>>, vector<2x64xf32>
    %c8_38 = arith.constant 8 : index
    %c0_39 = arith.constant 0 : index
    %25 = vector.load %arg21[%c8_38, %c0_39] : memref<16x192xf32, #tpu.memory_space<vmem>>, vector<2x64xf32>
    tpu.vector_store %arg21[%c8_38, %c0_39], %24 {strides = array<i32>} : memref<16x192xf32, #tpu.memory_space<vmem>>, vector<2x64xf32>,
    %c16 = arith.constant 16 : index
    %c0_40 = arith.constant 0 : index
    %26 = vector.load %arg1[%c16, %c0_40] : memref<32x64xf32, #tpu.memory_space<vmem>>, vector<2x64xf32>
    %c8_41 = arith.constant 8 : index
    %c64_42 = arith.constant 64 : index
    %27 = vector.load %arg21[%c8_41, %c64_42] : memref<16x192xf32, #tpu.memory_space<vmem>>, vector<2x64xf32>
    tpu.vector_store %arg21[%c8_41, %c64_42], %26 {strides = array<i32>} : memref<16x192xf32, #tpu.memory_space<vmem>>, vector<2x64xf32>,
    %c18 = arith.constant 18 : index
    %c0_43 = arith.constant 0 : index
    %28 = vector.load %arg1[%c18, %c0_43] : memref<32x64xf32, #tpu.memory_space<vmem>>, vector<2x64xf32>
    %c8_44 = arith.constant 8 : index
    %c128_45 = arith.constant 128 : index
    %29 = vector.load %arg21[%c8_44, %c128_45] : memref<16x192xf32, #tpu.memory_space<vmem>>, vector<2x64xf32>
    tpu.vector_store %arg21[%c8_44, %c128_45], %28 {strides = array<i32>} : memref<16x192xf32, #tpu.memory_space<vmem>>, vector<2x64xf32>,
    %c18_46 = arith.constant 18 : index
    %c0_47 = arith.constant 0 : index
    %30 = vector.load %arg1[%c18_46, %c0_47] : memref<32x64xf32, #tpu.memory_space<vmem>>, vector<2x64xf32>
    %c10_48 = arith.constant 10 : index
    %c0_49 = arith.constant 0 : index
    %31 = vector.load %arg21[%c10_48, %c0_49] : memref<16x192xf32, #tpu.memory_space<vmem>>, vector<2x64xf32>
    tpu.vector_store %arg21[%c10_48, %c0_49], %30 {strides = array<i32>} : memref<16x192xf32, #tpu.memory_space<vmem>>, vector<2x64xf32>,
    %c20 = arith.constant 20 : index
    %c0_50 = arith.constant 0 : index
    %32 = vector.load %arg1[%c20, %c0_50] : memref<32x64xf32, #tpu.memory_space<vmem>>, vector<2x64xf32>
    %c10_51 = arith.constant 10 : index
    %c64_52 = arith.constant 64 : index
    %33 = vector.load %arg21[%c10_51, %c64_52] : memref<16x192xf32, #tpu.memory_space<vmem>>, vector<2x64xf32>
    tpu.vector_store %arg21[%c10_51, %c64_52], %32 {strides = array<i32>} : memref<16x192xf32, #tpu.memory_space<vmem>>, vector<2x64xf32>,
    %c22 = arith.constant 22 : index
    %c0_53 = arith.constant 0 : index
    %34 = vector.load %arg1[%c22, %c0_53] : memref<32x64xf32, #tpu.memory_space<vmem>>, vector<2x64xf32>
    %c10_54 = arith.constant 10 : index
    %c128_55 = arith.constant 128 : index
    %35 = vector.load %arg21[%c10_54, %c128_55] : memref<16x192xf32, #tpu.memory_space<vmem>>, vector<2x64xf32>
    tpu.vector_store %arg21[%c10_54, %c128_55], %34 {strides = array<i32>} : memref<16x192xf32, #tpu.memory_space<vmem>>, vector<2x64xf32>,
    %c22_56 = arith.constant 22 : index
    %c0_57 = arith.constant 0 : index
    %36 = vector.load %arg1[%c22_56, %c0_57] : memref<32x64xf32, #tpu.memory_space<vmem>>, vector<2x64xf32>
    %c12_58 = arith.constant 12 : index
    %c0_59 = arith.constant 0 : index
    %37 = vector.load %arg21[%c12_58, %c0_59] : memref<16x192xf32, #tpu.memory_space<vmem>>, vector<2x64xf32>
    tpu.vector_store %arg21[%c12_58, %c0_59], %36 {strides = array<i32>} : memref<16x192xf32, #tpu.memory_space<vmem>>, vector<2x64xf32>,
    %c24 = arith.constant 24 : index
    %c0_60 = arith.constant 0 : index
    %38 = vector.load %arg1[%c24, %c0_60] : memref<32x64xf32, #tpu.memory_space<vmem>>, vector<2x64xf32>
    %c12_61 = arith.constant 12 : index
    %c64_62 = arith.constant 64 : index
    %39 = vector.load %arg21[%c12_61, %c64_62] : memref<16x192xf32, #tpu.memory_space<vmem>>, vector<2x64xf32>
    tpu.vector_store %arg21[%c12_61, %c64_62], %38 {strides = array<i32>} : memref<16x192xf32, #tpu.memory_space<vmem>>, vector<2x64xf32>,
    %c26 = arith.constant 26 : index
    %c0_63 = arith.constant 0 : index
    %40 = vector.load %arg1[%c26, %c0_63] : memref<32x64xf32, #tpu.memory_space<vmem>>, vector<2x64xf32>
    %c12_64 = arith.constant 12 : index
    %c128_65 = arith.constant 128 : index
    %41 = vector.load %arg21[%c12_64, %c128_65] : memref<16x192xf32, #tpu.memory_space<vmem>>, vector<2x64xf32>
    tpu.vector_store %arg21[%c12_64, %c128_65], %40 {strides = array<i32>} : memref<16x192xf32, #tpu.memory_space<vmem>>, vector<2x64xf32>,
    %c26_66 = arith.constant 26 : index
    %c0_67 = arith.constant 0 : index
    %42 = vector.load %arg1[%c26_66, %c0_67] : memref<32x64xf32, #tpu.memory_space<vmem>>, vector<2x64xf32>
    %c14_68 = arith.constant 14 : index
    %c0_69 = arith.constant 0 : index
    %43 = vector.load %arg21[%c14_68, %c0_69] : memref<16x192xf32, #tpu.memory_space<vmem>>, vector<2x64xf32>
    tpu.vector_store %arg21[%c14_68, %c0_69], %42 {strides = array<i32>} : memref<16x192xf32, #tpu.memory_space<vmem>>, vector<2x64xf32>,
    %c28 = arith.constant 28 : index
    %c0_70 = arith.constant 0 : index
    %44 = vector.load %arg1[%c28, %c0_70] : memref<32x64xf32, #tpu.memory_space<vmem>>, vector<2x64xf32>
    %c14_71 = arith.constant 14 : index
    %c64_72 = arith.constant 64 : index
    %45 = vector.load %arg21[%c14_71, %c64_72] : memref<16x192xf32, #tpu.memory_space<vmem>>, vector<2x64xf32>
    tpu.vector_store %arg21[%c14_71, %c64_72], %44 {strides = array<i32>} : memref<16x192xf32, #tpu.memory_space<vmem>>, vector<2x64xf32>,
    %c30 = arith.constant 30 : index
    %c0_73 = arith.constant 0 : index
    %46 = vector.load %arg1[%c30, %c0_73] : memref<32x64xf32, #tpu.memory_space<vmem>>, vector<2x64xf32>
    %c14_74 = arith.constant 14 : index
    %c128_75 = arith.constant 128 : index
    %47 = vector.load %arg21[%c14_74, %c128_75] : memref<16x192xf32, #tpu.memory_space<vmem>>, vector<2x64xf32>
    tpu.vector_store %arg21[%c14_74, %c128_75], %46 {strides = array<i32>} : memref<16x192xf32, #tpu.memory_space<vmem>>, vector<2x64xf32>,
    %c0_76 = arith.constant 0 : index
    %c0_77 = arith.constant 0 : index
    %48 = vector.load %arg21[%c0_76, %c0_77] : memref<16x192xf32, #tpu.memory_space<vmem>>, vector<16x192xf32>
    %c0_78 = arith.constant 0 : index
    %c0_79 = arith.constant 0 : index
    %49 = vector.load %arg3[%c0_78, %c0_79] : memref<192x64xf32, #tpu.memory_space<vmem>>, vector<192x64xf32>
    %cst_80 = arith.constant dense<0.000000e+00> : vector<16x64xf32>
    %50 = tpu.matmul %48, %49, %cst_80 {dimension_numbers = #tpu.dot_dimension_numbers<[1], [0], [0], [1], [0, 0, 1, 1], [], []>} : vector<16x192xf32>, vector<192x64xf32>, vector<16x64xf32> -> vector<16x64xf32>
    %c0_81 = arith.constant 0 : index
    %c0_82 = arith.constant 0 : index
    %51 = vector.load %arg4[%c0_81, %c0_82] : memref<1x64xf32, #tpu.memory_space<vmem>>, vector<1x64xf32>
    %52 = vector.broadcast %51 : vector<1x64xf32> to vector<16x64xf32>
    %53 = arith.addf %50, %52 : vector<16x64xf32>
    %cst_83 = arith.constant 0.000000e+00 : f32
    %54 = vector.broadcast %cst_83 : f32 to vector<16x64xf32>
    %55 = arith.maximumf %53, %54 : vector<16x64xf32>
    %cst_84 = arith.constant 0.000000e+00 : f32
    %56 = vector.broadcast %cst_84 : f32 to vector<8x192xf32>
    %c0_85 = arith.constant 0 : index
    %c0_86 = arith.constant 0 : index
    %57 = vector.load %arg22[%c0_85, %c0_86] : memref<8x192xf32, #tpu.memory_space<vmem>>, vector<8x192xf32>
    tpu.vector_store %arg22[%c0_85, %c0_86], %56 {strides = array<i32>} : memref<8x192xf32, #tpu.memory_space<vmem>>, vector<8x192xf32>,
    %58 = vector.extract_strided_slice %55 {offsets = [0, 0], sizes = [2, 64], strides = [1, 1]} : vector<16x64xf32> to vector<2x64xf32>
    %c0_87 = arith.constant 0 : index
    %c64_88 = arith.constant 64 : index
    %59 = vector.load %arg22[%c0_87, %c64_88] : memref<8x192xf32, #tpu.memory_space<vmem>>, vector<2x64xf32>
    tpu.vector_store %arg22[%c0_87, %c64_88], %58 {strides = array<i32>} : memref<8x192xf32, #tpu.memory_space<vmem>>, vector<2x64xf32>,
    %60 = vector.extract_strided_slice %55 {offsets = [2, 0], sizes = [2, 64], strides = [1, 1]} : vector<16x64xf32> to vector<2x64xf32>
    %c0_89 = arith.constant 0 : index
    %c128_90 = arith.constant 128 : index
    %61 = vector.load %arg22[%c0_89, %c128_90] : memref<8x192xf32, #tpu.memory_space<vmem>>, vector<2x64xf32>
    tpu.vector_store %arg22[%c0_89, %c128_90], %60 {strides = array<i32>} : memref<8x192xf32, #tpu.memory_space<vmem>>, vector<2x64xf32>,
    %62 = vector.extract_strided_slice %55 {offsets = [2, 0], sizes = [2, 64], strides = [1, 1]} : vector<16x64xf32> to vector<2x64xf32>
    %c2_91 = arith.constant 2 : index
    %c0_92 = arith.constant 0 : index
    %63 = vector.load %arg22[%c2_91, %c0_92] : memref<8x192xf32, #tpu.memory_space<vmem>>, vector<2x64xf32>
    tpu.vector_store %arg22[%c2_91, %c0_92], %62 {strides = array<i32>} : memref<8x192xf32, #tpu.memory_space<vmem>>, vector<2x64xf32>,
    %64 = vector.extract_strided_slice %55 {offsets = [4, 0], sizes = [2, 64], strides = [1, 1]} : vector<16x64xf32> to vector<2x64xf32>
    %c2_93 = arith.constant 2 : index
    %c64_94 = arith.constant 64 : index
    %65 = vector.load %arg22[%c2_93, %c64_94] : memref<8x192xf32, #tpu.memory_space<vmem>>, vector<2x64xf32>
    tpu.vector_store %arg22[%c2_93, %c64_94], %64 {strides = array<i32>} : memref<8x192xf32, #tpu.memory_space<vmem>>, vector<2x64xf32>,
    %66 = vector.extract_strided_slice %55 {offsets = [6, 0], sizes = [2, 64], strides = [1, 1]} : vector<16x64xf32> to vector<2x64xf32>
    %c2_95 = arith.constant 2 : index
    %c128_96 = arith.constant 128 : index
    %67 = vector.load %arg22[%c2_95, %c128_96] : memref<8x192xf32, #tpu.memory_space<vmem>>, vector<2x64xf32>
    tpu.vector_store %arg22[%c2_95, %c128_96], %66 {strides = array<i32>} : memref<8x192xf32, #tpu.memory_space<vmem>>, vector<2x64xf32>,
    %68 = vector.extract_strided_slice %55 {offsets = [6, 0], sizes = [2, 64], strides = [1, 1]} : vector<16x64xf32> to vector<2x64xf32>
    %c4_97 = arith.constant 4 : index
    %c0_98 = arith.constant 0 : index
    %69 = vector.load %arg22[%c4_97, %c0_98] : memref<8x192xf32, #tpu.memory_space<vmem>>, vector<2x64xf32>
    tpu.vector_store %arg22[%c4_97, %c0_98], %68 {strides = array<i32>} : memref<8x192xf32, #tpu.memory_space<vmem>>, vector<2x64xf32>,
    %70 = vector.extract_strided_slice %55 {offsets = [8, 0], sizes = [2, 64], strides = [1, 1]} : vector<16x64xf32> to vector<2x64xf32>
    %c4_99 = arith.constant 4 : index
    %c64_100 = arith.constant 64 : index
    %71 = vector.load %arg22[%c4_99, %c64_100] : memref<8x192xf32, #tpu.memory_space<vmem>>, vector<2x64xf32>
    tpu.vector_store %arg22[%c4_99, %c64_100], %70 {strides = array<i32>} : memref<8x192xf32, #tpu.memory_space<vmem>>, vector<2x64xf32>,
    %72 = vector.extract_strided_slice %55 {offsets = [10, 0], sizes = [2, 64], strides = [1, 1]} : vector<16x64xf32> to vector<2x64xf32>
    %c4_101 = arith.constant 4 : index
    %c128_102 = arith.constant 128 : index
    %73 = vector.load %arg22[%c4_101, %c128_102] : memref<8x192xf32, #tpu.memory_space<vmem>>, vector<2x64xf32>
    tpu.vector_store %arg22[%c4_101, %c128_102], %72 {strides = array<i32>} : memref<8x192xf32, #tpu.memory_space<vmem>>, vector<2x64xf32>,
    %74 = vector.extract_strided_slice %55 {offsets = [10, 0], sizes = [2, 64], strides = [1, 1]} : vector<16x64xf32> to vector<2x64xf32>
    %c6_103 = arith.constant 6 : index
    %c0_104 = arith.constant 0 : index
    %75 = vector.load %arg22[%c6_103, %c0_104] : memref<8x192xf32, #tpu.memory_space<vmem>>, vector<2x64xf32>
    tpu.vector_store %arg22[%c6_103, %c0_104], %74 {strides = array<i32>} : memref<8x192xf32, #tpu.memory_space<vmem>>, vector<2x64xf32>,
    %76 = vector.extract_strided_slice %55 {offsets = [12, 0], sizes = [2, 64], strides = [1, 1]} : vector<16x64xf32> to vector<2x64xf32>
    %c6_105 = arith.constant 6 : index
    %c64_106 = arith.constant 64 : index
    %77 = vector.load %arg22[%c6_105, %c64_106] : memref<8x192xf32, #tpu.memory_space<vmem>>, vector<2x64xf32>
    tpu.vector_store %arg22[%c6_105, %c64_106], %76 {strides = array<i32>} : memref<8x192xf32, #tpu.memory_space<vmem>>, vector<2x64xf32>,
    %78 = vector.extract_strided_slice %55 {offsets = [14, 0], sizes = [2, 64], strides = [1, 1]} : vector<16x64xf32> to vector<2x64xf32>
    %c6_107 = arith.constant 6 : index
    %c128_108 = arith.constant 128 : index
    %79 = vector.load %arg22[%c6_107, %c128_108] : memref<8x192xf32, #tpu.memory_space<vmem>>, vector<2x64xf32>
    tpu.vector_store %arg22[%c6_107, %c128_108], %78 {strides = array<i32>} : memref<8x192xf32, #tpu.memory_space<vmem>>, vector<2x64xf32>,
    %c0_109 = arith.constant 0 : index
    %c0_110 = arith.constant 0 : index
    %80 = vector.load %arg22[%c0_109, %c0_110] : memref<8x192xf32, #tpu.memory_space<vmem>>, vector<8x192xf32>
    %c0_111 = arith.constant 0 : index
    %c0_112 = arith.constant 0 : index
    %81 = vector.load %arg5[%c0_111, %c0_112] : memref<192x64xf32, #tpu.memory_space<vmem>>, vector<192x64xf32>
    %cst_113 = arith.constant dense<0.000000e+00> : vector<8x64xf32>
    %82 = tpu.matmul %80, %81, %cst_113 {dimension_numbers = #tpu.dot_dimension_numbers<[1], [0], [0], [1], [0, 0, 1, 1], [], []>} : vector<8x192xf32>, vector<192x64xf32>, vector<8x64xf32> -> vector<8x64xf32>
    %c0_114 = arith.constant 0 : index
    %c0_115 = arith.constant 0 : index
    %83 = vector.load %arg6[%c0_114, %c0_115] : memref<1x64xf32, #tpu.memory_space<vmem>>, vector<1x64xf32>
    %84 = vector.broadcast %83 : vector<1x64xf32> to vector<8x64xf32>
    %85 = arith.addf %82, %84 : vector<8x64xf32>
    %cst_116 = arith.constant 0.000000e+00 : f32
    %86 = vector.broadcast %cst_116 : f32 to vector<8x64xf32>
    %87 = arith.maximumf %85, %86 : vector<8x64xf32>
    %c0_117 = arith.constant 0 : index
    %c0_118 = arith.constant 0 : index
    %88 = vector.load %arg8[%c0_117, %c0_118] : memref<1x16xf32, #tpu.memory_space<vmem>>, vector<1x16xf32>
    %89 = vector.extract_strided_slice %87 {offsets = [0, 0], sizes = [2, 64], strides = [1, 1]} : vector<8x64xf32> to vector<2x64xf32>
    %c0_119 = arith.constant 0 : index
    %c0_120 = arith.constant 0 : index
    %90 = vector.load %arg7[%c0_119, %c0_120] : memref<256x16xf32, #tpu.memory_space<vmem>>, vector<64x16xf32>
    %cst_121 = arith.constant dense<0.000000e+00> : vector<2x16xf32>
    %91 = tpu.matmul %89, %90, %cst_121 {dimension_numbers = #tpu.dot_dimension_numbers<[1], [0], [0], [1], [0, 0, 1, 1], [], []>} : vector<2x64xf32>, vector<64x16xf32>, vector<2x16xf32> -> vector<2x16xf32>
    %92 = vector.broadcast %88 : vector<1x16xf32> to vector<2x16xf32>
    %93 = arith.addf %92, %91 : vector<2x16xf32>
    %94 = vector.extract_strided_slice %87 {offsets = [2, 0], sizes = [2, 64], strides = [1, 1]} : vector<8x64xf32> to vector<2x64xf32>
    %c64_122 = arith.constant 64 : index
    %c0_123 = arith.constant 0 : index
    %95 = vector.load %arg7[%c64_122, %c0_123] : memref<256x16xf32, #tpu.memory_space<vmem>>, vector<64x16xf32>
    %cst_124 = arith.constant dense<0.000000e+00> : vector<2x16xf32>
    %96 = tpu.matmul %94, %95, %cst_124 {dimension_numbers = #tpu.dot_dimension_numbers<[1], [0], [0], [1], [0, 0, 1, 1], [], []>} : vector<2x64xf32>, vector<64x16xf32>, vector<2x16xf32> -> vector<2x16xf32>
    %97 = arith.addf %93, %96 : vector<2x16xf32>
    %98 = vector.extract_strided_slice %87 {offsets = [4, 0], sizes = [2, 64], strides = [1, 1]} : vector<8x64xf32> to vector<2x64xf32>
    %c128_125 = arith.constant 128 : index
    %c0_126 = arith.constant 0 : index
    %99 = vector.load %arg7[%c128_125, %c0_126] : memref<256x16xf32, #tpu.memory_space<vmem>>, vector<64x16xf32>
    %cst_127 = arith.constant dense<0.000000e+00> : vector<2x16xf32>
    %100 = tpu.matmul %98, %99, %cst_127 {dimension_numbers = #tpu.dot_dimension_numbers<[1], [0], [0], [1], [0, 0, 1, 1], [], []>} : vector<2x64xf32>, vector<64x16xf32>, vector<2x16xf32> -> vector<2x16xf32>
    %101 = arith.addf %97, %100 : vector<2x16xf32>
    %102 = vector.extract_strided_slice %87 {offsets = [6, 0], sizes = [2, 64], strides = [1, 1]} : vector<8x64xf32> to vector<2x64xf32>
    %c192 = arith.constant 192 : index
    %c0_128 = arith.constant 0 : index
    %103 = vector.load %arg7[%c192, %c0_128] : memref<256x16xf32, #tpu.memory_space<vmem>>, vector<64x16xf32>
    %cst_129 = arith.constant dense<0.000000e+00> : vector<2x16xf32>
    %104 = tpu.matmul %102, %103, %cst_129 {dimension_numbers = #tpu.dot_dimension_numbers<[1], [0], [0], [1], [0, 0, 1, 1], [], []>} : vector<2x64xf32>, vector<64x16xf32>, vector<2x16xf32> -> vector<2x16xf32>
    %105 = arith.addf %101, %104 : vector<2x16xf32>
    %106 = vector.extract_strided_slice %105 {offsets = [0, 0], sizes = [2, 8], strides = [1, 1]} : vector<2x16xf32> to vector<2x8xf32>
    %107 = vector.extract_strided_slice %105 {offsets = [0, 8], sizes = [2, 8], strides = [1, 1]} : vector<2x16xf32> to vector<2x8xf32>
    %cst_130 = arith.constant 0.000000e+00 : f32
    %108 = vector.broadcast %cst_130 : f32 to vector<2x8xf32>
    %109 = arith.maximumf %107, %108 : vector<2x8xf32>
    %110 = math.absf %107 : vector<2x8xf32>
    %cst_131 = arith.constant 0.000000e+00 : f32
    %111 = vector.broadcast %cst_131 : f32 to vector<2x8xf32>
    %112 = arith.subf %111, %110 : vector<2x8xf32>
    %113 = math.exp %112 : vector<2x8xf32>
    %cst_132 = arith.constant 1.000000e+00 : f32
    %114 = vector.broadcast %cst_132 : f32 to vector<2x8xf32>
    %115 = arith.addf %114, %113 : vector<2x8xf32>
    %116 = math.log %115 : vector<2x8xf32>
    %117 = arith.addf %109, %116 : vector<2x8xf32>
    %c0_133 = arith.constant 0 : index
    %c0_134 = arith.constant 0 : index
    %118 = vector.load %arg2[%c0_133, %c0_134] : memref<2x8xf32, #tpu.memory_space<vmem>>, vector<2x8xf32>
    %119 = math.sqrt %117 : vector<2x8xf32>
    %120 = arith.mulf %119, %118 : vector<2x8xf32>
    %121 = arith.mulf %106, %106 : vector<2x8xf32>
    %cst_135 = arith.constant dense<0.000000e+00> : vector<2xf32>
    %122 = vector.multi_reduction <add>, %121, %cst_135 [1] : vector<2x8xf32> to vector<2xf32>
    %123 = vector.shape_cast %122 : vector<2xf32> to vector<2x1xf32>
    %124 = math.sqrt %123 : vector<2x1xf32>
    %125 = math.exp %124 : vector<2x1xf32>
    %cst_136 = arith.constant 1.000000e+00 : f32
    %126 = vector.broadcast %cst_136 : f32 to vector<2x1xf32>
    %127 = arith.divf %126, %125 : vector<2x1xf32>
    %128 = arith.addf %125, %127 : vector<2x1xf32>
    %cst_137 = arith.constant 5.000000e-01 : f32
    %129 = vector.broadcast %cst_137 : f32 to vector<2x1xf32>
    %130 = arith.mulf %129, %128 : vector<2x1xf32>
    %cst_138 = arith.constant 9.99999974E-5 : f32
    %131 = vector.broadcast %cst_138 : f32 to vector<2x1xf32>
    %132 = arith.cmpf olt, %124, %131 : vector<2x1xf32>
    %cst_139 = arith.constant 6.000000e+00 : f32
    %133 = vector.broadcast %cst_139 : f32 to vector<2x1xf32>
    %134 = arith.divf %123, %133 : vector<2x1xf32>
    %cst_140 = arith.constant 1.000000e+00 : f32
    %135 = vector.broadcast %cst_140 : f32 to vector<2x1xf32>
    %136 = arith.addf %135, %134 : vector<2x1xf32>
    %137 = arith.subf %125, %127 : vector<2x1xf32>
    %cst_141 = arith.constant 5.000000e-01 : f32
    %138 = vector.broadcast %cst_141 : f32 to vector<2x1xf32>
    %139 = arith.mulf %138, %137 : vector<2x1xf32>
    %cst_142 = arith.constant 9.99999993E-9 : f32
    %140 = vector.broadcast %cst_142 : f32 to vector<2x1xf32>
    %141 = arith.maximumf %124, %140 : vector<2x1xf32>
    %142 = arith.divf %139, %141 : vector<2x1xf32>
    %143 = arith.select %132, %136, %142 : vector<2x1xi1>, vector<2x1xf32>
    %144 = vector.broadcast %143 : vector<2x1xf32> to vector<2x8xf32>
    %145 = arith.mulf %144, %106 : vector<2x8xf32>
    %146 = arith.mulf %145, %120 : vector<2x8xf32>
    %cst_143 = arith.constant dense<0.000000e+00> : vector<2xf32>
    %147 = vector.multi_reduction <add>, %146, %cst_143 [1] : vector<2x8xf32> to vector<2xf32>
    %148 = vector.shape_cast %147 : vector<2xf32> to vector<2x1xf32>
    %cst_144 = arith.constant 1.000000e+00 : f32
    %149 = vector.broadcast %cst_144 : f32 to vector<2x1xf32>
    %150 = arith.addf %149, %130 : vector<2x1xf32>
    %151 = arith.divf %148, %150 : vector<2x1xf32>
    %152 = vector.broadcast %151 : vector<2x1xf32> to vector<2x8xf32>
    %153 = arith.mulf %152, %145 : vector<2x8xf32>
    %154 = arith.addf %120, %153 : vector<2x8xf32>
    %155 = arith.mulf %154, %154 : vector<2x8xf32>
    %cst_145 = arith.constant dense<0.000000e+00> : vector<2xf32>
    %156 = vector.multi_reduction <add>, %155, %cst_145 [1] : vector<2x8xf32> to vector<2xf32>
    %157 = vector.shape_cast %156 : vector<2xf32> to vector<2x1xf32>
    %158 = arith.mulf %148, %148 : vector<2x1xf32>
    %159 = arith.subf %157, %158 : vector<2x1xf32>
    %cst_146 = arith.constant 0.000000e+00 : f32
    %160 = vector.broadcast %cst_146 : f32 to vector<2x1xf32>
    %161 = arith.maximumf %159, %160 : vector<2x1xf32>
    %162 = math.sqrt %161 : vector<2x1xf32>
    %163 = math.exp %162 : vector<2x1xf32>
    %cst_147 = arith.constant 1.000000e+00 : f32
    %164 = vector.broadcast %cst_147 : f32 to vector<2x1xf32>
    %165 = arith.divf %164, %163 : vector<2x1xf32>
    %166 = arith.addf %163, %165 : vector<2x1xf32>
    %cst_148 = arith.constant 5.000000e-01 : f32
    %167 = vector.broadcast %cst_148 : f32 to vector<2x1xf32>
    %168 = arith.mulf %167, %166 : vector<2x1xf32>
    %cst_149 = arith.constant 9.99999974E-5 : f32
    %169 = vector.broadcast %cst_149 : f32 to vector<2x1xf32>
    %170 = arith.cmpf olt, %162, %169 : vector<2x1xf32>
    %cst_150 = arith.constant 6.000000e+00 : f32
    %171 = vector.broadcast %cst_150 : f32 to vector<2x1xf32>
    %172 = arith.divf %161, %171 : vector<2x1xf32>
    %cst_151 = arith.constant 1.000000e+00 : f32
    %173 = vector.broadcast %cst_151 : f32 to vector<2x1xf32>
    %174 = arith.addf %173, %172 : vector<2x1xf32>
    %175 = arith.subf %163, %165 : vector<2x1xf32>
    %cst_152 = arith.constant 5.000000e-01 : f32
    %176 = vector.broadcast %cst_152 : f32 to vector<2x1xf32>
    %177 = arith.mulf %176, %175 : vector<2x1xf32>
    %cst_153 = arith.constant 9.99999993E-9 : f32
    %178 = vector.broadcast %cst_153 : f32 to vector<2x1xf32>
    %179 = arith.maximumf %162, %178 : vector<2x1xf32>
    %180 = arith.divf %177, %179 : vector<2x1xf32>
    %181 = arith.select %170, %174, %180 : vector<2x1xi1>, vector<2x1xf32>
    %182 = arith.mulf %168, %130 : vector<2x1xf32>
    %183 = arith.mulf %181, %148 : vector<2x1xf32>
    %184 = arith.addf %182, %183 : vector<2x1xf32>
    %185 = vector.broadcast %168 : vector<2x1xf32> to vector<2x8xf32>
    %186 = arith.mulf %185, %145 : vector<2x8xf32>
    %187 = vector.broadcast %181 : vector<2x1xf32> to vector<2x8xf32>
    %188 = arith.mulf %187, %154 : vector<2x8xf32>
    %189 = arith.addf %186, %188 : vector<2x8xf32>
    %c0_154 = arith.constant 0 : index
    %c0_155 = arith.constant 0 : index
    %190 = vector.load %arg16[%c0_154, %c0_155] : memref<2x9xf32, #tpu.memory_space<vmem>>, vector<2x1xf32>
    tpu.vector_store %arg16[%c0_154, %c0_155], %184 {strides = array<i32>} : memref<2x9xf32, #tpu.memory_space<vmem>>, vector<2x1xf32>,
    %c0_156 = arith.constant 0 : index
    %c1 = arith.constant 1 : index
    %191 = vector.load %arg16[%c0_156, %c1] : memref<2x9xf32, #tpu.memory_space<vmem>>, vector<2x8xf32>
    tpu.vector_store %arg16[%c0_156, %c1], %189 {strides = array<i32>} : memref<2x9xf32, #tpu.memory_space<vmem>>, vector<2x8xf32>,
    %c0_157 = arith.constant 0 : index
    %c0_158 = arith.constant 0 : index
    %192 = vector.load %arg17[%c0_157, %c0_158] : memref<2x9xf32, #tpu.memory_space<vmem>>, vector<2x1xf32>
    tpu.vector_store %arg17[%c0_157, %c0_158], %130 {strides = array<i32>} : memref<2x9xf32, #tpu.memory_space<vmem>>, vector<2x1xf32>,
    %c0_159 = arith.constant 0 : index
    %c1_160 = arith.constant 1 : index
    %193 = vector.load %arg17[%c0_159, %c1_160] : memref<2x9xf32, #tpu.memory_space<vmem>>, vector<2x8xf32>
    tpu.vector_store %arg17[%c0_159, %c1_160], %145 {strides = array<i32>} : memref<2x9xf32, #tpu.memory_space<vmem>>, vector<2x8xf32>,
    %c0_161 = arith.constant 0 : index
    %c0_162 = arith.constant 0 : index
    %194 = vector.load %arg19[%c0_161, %c0_162] : memref<2x9xf32, #tpu.memory_space<vmem>>, vector<2x1xf32>
    tpu.vector_store %arg19[%c0_161, %c0_162], %148 {strides = array<i32>} : memref<2x9xf32, #tpu.memory_space<vmem>>, vector<2x1xf32>,
    %c0_163 = arith.constant 0 : index
    %c1_164 = arith.constant 1 : index
    %195 = vector.load %arg19[%c0_163, %c1_164] : memref<2x9xf32, #tpu.memory_space<vmem>>, vector<2x8xf32>
    tpu.vector_store %arg19[%c0_163, %c1_164], %154 {strides = array<i32>} : memref<2x9xf32, #tpu.memory_space<vmem>>, vector<2x8xf32>,
    %c0_165 = arith.constant 0 : index
    %c0_166 = arith.constant 0 : index
    %196 = vector.load %arg20[%c0_165, %c0_166] : memref<2x8xf32, #tpu.memory_space<vmem>>, vector<2x8xf32>
    tpu.vector_store %arg20[%c0_165, %c0_166], %120 {strides = array<i32>} : memref<2x8xf32, #tpu.memory_space<vmem>>, vector<2x8xf32>,
    %c0_167 = arith.constant 0 : index
    %c0_168 = arith.constant 0 : index
    %197 = vector.load %arg18[%c0_167, %c0_168] : memref<2x8xf32, #tpu.memory_space<vmem>>, vector<2x8xf32>
    tpu.vector_store %arg18[%c0_167, %c0_168], %117 {strides = array<i32>} : memref<2x8xf32, #tpu.memory_space<vmem>>, vector<2x8xf32>,
    %cst_169 = arith.constant 1.00000012 : f32
    %198 = vector.broadcast %cst_169 : f32 to vector<2x1xf32>
    %199 = arith.maximumf %184, %198 : vector<2x1xf32>
    %200 = arith.mulf %189, %189 : vector<2x8xf32>
    %cst_170 = arith.constant dense<0.000000e+00> : vector<2xf32>
    %201 = vector.multi_reduction <add>, %200, %cst_170 [1] : vector<2x8xf32> to vector<2xf32>
    %202 = vector.shape_cast %201 : vector<2xf32> to vector<2x1xf32>
    %cst_171 = arith.constant 9.99999996E-13 : f32
    %203 = vector.broadcast %cst_171 : f32 to vector<2x1xf32>
    %204 = arith.maximumf %202, %203 : vector<2x1xf32>
    %205 = math.sqrt %204 : vector<2x1xf32>
    %206 = arith.mulf %199, %199 : vector<2x1xf32>
    %cst_172 = arith.constant 1.000000e+00 : f32
    %207 = vector.broadcast %cst_172 : f32 to vector<2x1xf32>
    %208 = arith.subf %206, %207 : vector<2x1xf32>
    %209 = math.sqrt %208 : vector<2x1xf32>
    %210 = arith.addf %199, %209 : vector<2x1xf32>
    %211 = math.log %210 : vector<2x1xf32>
    %212 = arith.divf %211, %205 : vector<2x1xf32>
    %213 = vector.broadcast %212 : vector<2x1xf32> to vector<2x8xf32>
    %214 = arith.mulf %213, %189 : vector<2x8xf32>
    %c0_173 = arith.constant 0 : index
    %c0_174 = arith.constant 0 : index
    %215 = vector.load %arg9[%c0_173, %c0_174] : memref<8x256xf32, #tpu.memory_space<vmem>>, vector<8x256xf32>
    %cst_175 = arith.constant dense<0.000000e+00> : vector<2x256xf32>
    %216 = tpu.matmul %214, %215, %cst_175 {dimension_numbers = #tpu.dot_dimension_numbers<[1], [0], [0], [1], [0, 0, 1, 1], [], []>} : vector<2x8xf32>, vector<8x256xf32>, vector<2x256xf32> -> vector<2x256xf32>
    %c0_176 = arith.constant 0 : index
    %c0_177 = arith.constant 0 : index
    %217 = vector.load %arg10[%c0_176, %c0_177] : memref<1x256xf32, #tpu.memory_space<vmem>>, vector<1x256xf32>
    %218 = vector.broadcast %217 : vector<1x256xf32> to vector<2x256xf32>
    %219 = arith.addf %216, %218 : vector<2x256xf32>
    %cst_178 = arith.constant 0.000000e+00 : f32
    %220 = vector.broadcast %cst_178 : f32 to vector<2x256xf32>
    %221 = arith.maximumf %219, %220 : vector<2x256xf32>
    %cst_179 = arith.constant 0.000000e+00 : f32
    %222 = vector.broadcast %cst_179 : f32 to vector<16x192xf32>
    %c0_180 = arith.constant 0 : index
    %c0_181 = arith.constant 0 : index
    %223 = vector.load %arg23[%c0_180, %c0_181] : memref<16x192xf32, #tpu.memory_space<vmem>>, vector<16x192xf32>
    tpu.vector_store %arg23[%c0_180, %c0_181], %222 {strides = array<i32>} : memref<16x192xf32, #tpu.memory_space<vmem>>, vector<16x192xf32>,
    %224 = vector.extract_strided_slice %221 {offsets = [0, 0], sizes = [2, 64], strides = [1, 1]} : vector<2x256xf32> to vector<2x64xf32>
    %c0_182 = arith.constant 0 : index
    %c64_183 = arith.constant 64 : index
    %225 = vector.load %arg23[%c0_182, %c64_183] : memref<16x192xf32, #tpu.memory_space<vmem>>, vector<2x64xf32>
    tpu.vector_store %arg23[%c0_182, %c64_183], %224 {strides = array<i32>} : memref<16x192xf32, #tpu.memory_space<vmem>>, vector<2x64xf32>,
    %226 = vector.extract_strided_slice %221 {offsets = [0, 0], sizes = [2, 64], strides = [1, 1]} : vector<2x256xf32> to vector<2x64xf32>
    %c2_184 = arith.constant 2 : index
    %c0_185 = arith.constant 0 : index
    %227 = vector.load %arg23[%c2_184, %c0_185] : memref<16x192xf32, #tpu.memory_space<vmem>>, vector<2x64xf32>
    tpu.vector_store %arg23[%c2_184, %c0_185], %226 {strides = array<i32>} : memref<16x192xf32, #tpu.memory_space<vmem>>, vector<2x64xf32>,
    %228 = vector.extract_strided_slice %221 {offsets = [0, 64], sizes = [2, 64], strides = [1, 1]} : vector<2x256xf32> to vector<2x64xf32>
    %c2_186 = arith.constant 2 : index
    %c128_187 = arith.constant 128 : index
    %229 = vector.load %arg23[%c2_186, %c128_187] : memref<16x192xf32, #tpu.memory_space<vmem>>, vector<2x64xf32>
    tpu.vector_store %arg23[%c2_186, %c128_187], %228 {strides = array<i32>} : memref<16x192xf32, #tpu.memory_space<vmem>>, vector<2x64xf32>,
    %230 = vector.extract_strided_slice %221 {offsets = [0, 64], sizes = [2, 64], strides = [1, 1]} : vector<2x256xf32> to vector<2x64xf32>
    %c4_188 = arith.constant 4 : index
    %c64_189 = arith.constant 64 : index
    %231 = vector.load %arg23[%c4_188, %c64_189] : memref<16x192xf32, #tpu.memory_space<vmem>>, vector<2x64xf32>
    tpu.vector_store %arg23[%c4_188, %c64_189], %230 {strides = array<i32>} : memref<16x192xf32, #tpu.memory_space<vmem>>, vector<2x64xf32>,
    %232 = vector.extract_strided_slice %221 {offsets = [0, 64], sizes = [2, 64], strides = [1, 1]} : vector<2x256xf32> to vector<2x64xf32>
    %c6_190 = arith.constant 6 : index
    %c0_191 = arith.constant 0 : index
    %233 = vector.load %arg23[%c6_190, %c0_191] : memref<16x192xf32, #tpu.memory_space<vmem>>, vector<2x64xf32>
    tpu.vector_store %arg23[%c6_190, %c0_191], %232 {strides = array<i32>} : memref<16x192xf32, #tpu.memory_space<vmem>>, vector<2x64xf32>,
    %234 = vector.extract_strided_slice %221 {offsets = [0, 128], sizes = [2, 64], strides = [1, 1]} : vector<2x256xf32> to vector<2x64xf32>
    %c6_192 = arith.constant 6 : index
    %c128_193 = arith.constant 128 : index
    %235 = vector.load %arg23[%c6_192, %c128_193] : memref<16x192xf32, #tpu.memory_space<vmem>>, vector<2x64xf32>
    tpu.vector_store %arg23[%c6_192, %c128_193], %234 {strides = array<i32>} : memref<16x192xf32, #tpu.memory_space<vmem>>, vector<2x64xf32>,
    %236 = vector.extract_strided_slice %221 {offsets = [0, 128], sizes = [2, 64], strides = [1, 1]} : vector<2x256xf32> to vector<2x64xf32>
    %c8_194 = arith.constant 8 : index
    %c64_195 = arith.constant 64 : index
    %237 = vector.load %arg23[%c8_194, %c64_195] : memref<16x192xf32, #tpu.memory_space<vmem>>, vector<2x64xf32>
    tpu.vector_store %arg23[%c8_194, %c64_195], %236 {strides = array<i32>} : memref<16x192xf32, #tpu.memory_space<vmem>>, vector<2x64xf32>,
    %238 = vector.extract_strided_slice %221 {offsets = [0, 128], sizes = [2, 64], strides = [1, 1]} : vector<2x256xf32> to vector<2x64xf32>
    %c10_196 = arith.constant 10 : index
    %c0_197 = arith.constant 0 : index
    %239 = vector.load %arg23[%c10_196, %c0_197] : memref<16x192xf32, #tpu.memory_space<vmem>>, vector<2x64xf32>
    tpu.vector_store %arg23[%c10_196, %c0_197], %238 {strides = array<i32>} : memref<16x192xf32, #tpu.memory_space<vmem>>, vector<2x64xf32>,
    %240 = vector.extract_strided_slice %221 {offsets = [0, 192], sizes = [2, 64], strides = [1, 1]} : vector<2x256xf32> to vector<2x64xf32>
    %c10_198 = arith.constant 10 : index
    %c128_199 = arith.constant 128 : index
    %241 = vector.load %arg23[%c10_198, %c128_199] : memref<16x192xf32, #tpu.memory_space<vmem>>, vector<2x64xf32>
    tpu.vector_store %arg23[%c10_198, %c128_199], %240 {strides = array<i32>} : memref<16x192xf32, #tpu.memory_space<vmem>>, vector<2x64xf32>,
    %242 = vector.extract_strided_slice %221 {offsets = [0, 192], sizes = [2, 64], strides = [1, 1]} : vector<2x256xf32> to vector<2x64xf32>
    %c12_200 = arith.constant 12 : index
    %c64_201 = arith.constant 64 : index
    %243 = vector.load %arg23[%c12_200, %c64_201] : memref<16x192xf32, #tpu.memory_space<vmem>>, vector<2x64xf32>
    tpu.vector_store %arg23[%c12_200, %c64_201], %242 {strides = array<i32>} : memref<16x192xf32, #tpu.memory_space<vmem>>, vector<2x64xf32>,
    %244 = vector.extract_strided_slice %221 {offsets = [0, 192], sizes = [2, 64], strides = [1, 1]} : vector<2x256xf32> to vector<2x64xf32>
    %c14_202 = arith.constant 14 : index
    %c0_203 = arith.constant 0 : index
    %245 = vector.load %arg23[%c14_202, %c0_203] : memref<16x192xf32, #tpu.memory_space<vmem>>, vector<2x64xf32>
    tpu.vector_store %arg23[%c14_202, %c0_203], %244 {strides = array<i32>} : memref<16x192xf32, #tpu.memory_space<vmem>>, vector<2x64xf32>,
    %c0_204 = arith.constant 0 : index
    %c0_205 = arith.constant 0 : index
    %246 = vector.load %arg23[%c0_204, %c0_205] : memref<16x192xf32, #tpu.memory_space<vmem>>, vector<16x192xf32>
    %c0_206 = arith.constant 0 : index
    %c0_207 = arith.constant 0 : index
    %247 = vector.load %arg11[%c0_206, %c0_207] : memref<192x64xf32, #tpu.memory_space<vmem>>, vector<192x64xf32>
    %cst_208 = arith.constant dense<0.000000e+00> : vector<16x64xf32>
    %248 = tpu.matmul %246, %247, %cst_208 {dimension_numbers = #tpu.dot_dimension_numbers<[1], [0], [0], [1], [0, 0, 1, 1], [], []>} : vector<16x192xf32>, vector<192x64xf32>, vector<16x64xf32> -> vector<16x64xf32>
    %c0_209 = arith.constant 0 : index
    %c0_210 = arith.constant 0 : index
    %249 = vector.load %arg12[%c0_209, %c0_210] : memref<1x64xf32, #tpu.memory_space<vmem>>, vector<1x64xf32>
    %250 = vector.broadcast %249 : vector<1x64xf32> to vector<16x64xf32>
    %251 = arith.addf %248, %250 : vector<16x64xf32>
    %cst_211 = arith.constant 0.000000e+00 : f32
    %252 = vector.broadcast %cst_211 : f32 to vector<16x64xf32>
    %253 = arith.maximumf %251, %252 : vector<16x64xf32>
    %cst_212 = arith.constant 0.000000e+00 : f32
    %254 = vector.broadcast %cst_212 : f32 to vector<32x192xf32>
    %c0_213 = arith.constant 0 : index
    %c0_214 = arith.constant 0 : index
    %255 = vector.load %arg24[%c0_213, %c0_214] : memref<32x192xf32, #tpu.memory_space<vmem>>, vector<32x192xf32>
    tpu.vector_store %arg24[%c0_213, %c0_214], %254 {strides = array<i32>} : memref<32x192xf32, #tpu.memory_space<vmem>>, vector<32x192xf32>,
    %256 = vector.extract_strided_slice %253 {offsets = [0, 0], sizes = [2, 64], strides = [1, 1]} : vector<16x64xf32> to vector<2x64xf32>
    %c0_215 = arith.constant 0 : index
    %c64_216 = arith.constant 64 : index
    %257 = vector.load %arg24[%c0_215, %c64_216] : memref<32x192xf32, #tpu.memory_space<vmem>>, vector<2x64xf32>
    tpu.vector_store %arg24[%c0_215, %c64_216], %256 {strides = array<i32>} : memref<32x192xf32, #tpu.memory_space<vmem>>, vector<2x64xf32>,
    %258 = vector.extract_strided_slice %253 {offsets = [0, 0], sizes = [2, 64], strides = [1, 1]} : vector<16x64xf32> to vector<2x64xf32>
    %c2_217 = arith.constant 2 : index
    %c0_218 = arith.constant 0 : index
    %259 = vector.load %arg24[%c2_217, %c0_218] : memref<32x192xf32, #tpu.memory_space<vmem>>, vector<2x64xf32>
    tpu.vector_store %arg24[%c2_217, %c0_218], %258 {strides = array<i32>} : memref<32x192xf32, #tpu.memory_space<vmem>>, vector<2x64xf32>,
    %260 = vector.extract_strided_slice %253 {offsets = [2, 0], sizes = [2, 64], strides = [1, 1]} : vector<16x64xf32> to vector<2x64xf32>
    %c2_219 = arith.constant 2 : index
    %c128_220 = arith.constant 128 : index
    %261 = vector.load %arg24[%c2_219, %c128_220] : memref<32x192xf32, #tpu.memory_space<vmem>>, vector<2x64xf32>
    tpu.vector_store %arg24[%c2_219, %c128_220], %260 {strides = array<i32>} : memref<32x192xf32, #tpu.memory_space<vmem>>, vector<2x64xf32>,
    %262 = vector.extract_strided_slice %253 {offsets = [2, 0], sizes = [2, 64], strides = [1, 1]} : vector<16x64xf32> to vector<2x64xf32>
    %c4_221 = arith.constant 4 : index
    %c64_222 = arith.constant 64 : index
    %263 = vector.load %arg24[%c4_221, %c64_222] : memref<32x192xf32, #tpu.memory_space<vmem>>, vector<2x64xf32>
    tpu.vector_store %arg24[%c4_221, %c64_222], %262 {strides = array<i32>} : memref<32x192xf32, #tpu.memory_space<vmem>>, vector<2x64xf32>,
    %264 = vector.extract_strided_slice %253 {offsets = [2, 0], sizes = [2, 64], strides = [1, 1]} : vector<16x64xf32> to vector<2x64xf32>
    %c6_223 = arith.constant 6 : index
    %c0_224 = arith.constant 0 : index
    %265 = vector.load %arg24[%c6_223, %c0_224] : memref<32x192xf32, #tpu.memory_space<vmem>>, vector<2x64xf32>
    tpu.vector_store %arg24[%c6_223, %c0_224], %264 {strides = array<i32>} : memref<32x192xf32, #tpu.memory_space<vmem>>, vector<2x64xf32>,
    %266 = vector.extract_strided_slice %253 {offsets = [4, 0], sizes = [2, 64], strides = [1, 1]} : vector<16x64xf32> to vector<2x64xf32>
    %c6_225 = arith.constant 6 : index
    %c128_226 = arith.constant 128 : index
    %267 = vector.load %arg24[%c6_225, %c128_226] : memref<32x192xf32, #tpu.memory_space<vmem>>, vector<2x64xf32>
    tpu.vector_store %arg24[%c6_225, %c128_226], %266 {strides = array<i32>} : memref<32x192xf32, #tpu.memory_space<vmem>>, vector<2x64xf32>,
    %268 = vector.extract_strided_slice %253 {offsets = [4, 0], sizes = [2, 64], strides = [1, 1]} : vector<16x64xf32> to vector<2x64xf32>
    %c8_227 = arith.constant 8 : index
    %c64_228 = arith.constant 64 : index
    %269 = vector.load %arg24[%c8_227, %c64_228] : memref<32x192xf32, #tpu.memory_space<vmem>>, vector<2x64xf32>
    tpu.vector_store %arg24[%c8_227, %c64_228], %268 {strides = array<i32>} : memref<32x192xf32, #tpu.memory_space<vmem>>, vector<2x64xf32>,
    %270 = vector.extract_strided_slice %253 {offsets = [4, 0], sizes = [2, 64], strides = [1, 1]} : vector<16x64xf32> to vector<2x64xf32>
    %c10_229 = arith.constant 10 : index
    %c0_230 = arith.constant 0 : index
    %271 = vector.load %arg24[%c10_229, %c0_230] : memref<32x192xf32, #tpu.memory_space<vmem>>, vector<2x64xf32>
    tpu.vector_store %arg24[%c10_229, %c0_230], %270 {strides = array<i32>} : memref<32x192xf32, #tpu.memory_space<vmem>>, vector<2x64xf32>,
    %272 = vector.extract_strided_slice %253 {offsets = [6, 0], sizes = [2, 64], strides = [1, 1]} : vector<16x64xf32> to vector<2x64xf32>
    %c10_231 = arith.constant 10 : index
    %c128_232 = arith.constant 128 : index
    %273 = vector.load %arg24[%c10_231, %c128_232] : memref<32x192xf32, #tpu.memory_space<vmem>>, vector<2x64xf32>
    tpu.vector_store %arg24[%c10_231, %c128_232], %272 {strides = array<i32>} : memref<32x192xf32, #tpu.memory_space<vmem>>, vector<2x64xf32>,
    %274 = vector.extract_strided_slice %253 {offsets = [6, 0], sizes = [2, 64], strides = [1, 1]} : vector<16x64xf32> to vector<2x64xf32>
    %c12_233 = arith.constant 12 : index
    %c64_234 = arith.constant 64 : index
    %275 = vector.load %arg24[%c12_233, %c64_234] : memref<32x192xf32, #tpu.memory_space<vmem>>, vector<2x64xf32>
    tpu.vector_store %arg24[%c12_233, %c64_234], %274 {strides = array<i32>} : memref<32x192xf32, #tpu.memory_space<vmem>>, vector<2x64xf32>,
    %276 = vector.extract_strided_slice %253 {offsets = [6, 0], sizes = [2, 64], strides = [1, 1]} : vector<16x64xf32> to vector<2x64xf32>
    %c14_235 = arith.constant 14 : index
    %c0_236 = arith.constant 0 : index
    %277 = vector.load %arg24[%c14_235, %c0_236] : memref<32x192xf32, #tpu.memory_space<vmem>>, vector<2x64xf32>
    tpu.vector_store %arg24[%c14_235, %c0_236], %276 {strides = array<i32>} : memref<32x192xf32, #tpu.memory_space<vmem>>, vector<2x64xf32>,
    %278 = vector.extract_strided_slice %253 {offsets = [8, 0], sizes = [2, 64], strides = [1, 1]} : vector<16x64xf32> to vector<2x64xf32>
    %c14_237 = arith.constant 14 : index
    %c128_238 = arith.constant 128 : index
    %279 = vector.load %arg24[%c14_237, %c128_238] : memref<32x192xf32, #tpu.memory_space<vmem>>, vector<2x64xf32>
    tpu.vector_store %arg24[%c14_237, %c128_238], %278 {strides = array<i32>} : memref<32x192xf32, #tpu.memory_space<vmem>>, vector<2x64xf32>,
    %280 = vector.extract_strided_slice %253 {offsets = [8, 0], sizes = [2, 64], strides = [1, 1]} : vector<16x64xf32> to vector<2x64xf32>
    %c16_239 = arith.constant 16 : index
    %c64_240 = arith.constant 64 : index
    %281 = vector.load %arg24[%c16_239, %c64_240] : memref<32x192xf32, #tpu.memory_space<vmem>>, vector<2x64xf32>
    tpu.vector_store %arg24[%c16_239, %c64_240], %280 {strides = array<i32>} : memref<32x192xf32, #tpu.memory_space<vmem>>, vector<2x64xf32>,
    %282 = vector.extract_strided_slice %253 {offsets = [8, 0], sizes = [2, 64], strides = [1, 1]} : vector<16x64xf32> to vector<2x64xf32>
    %c18_241 = arith.constant 18 : index
    %c0_242 = arith.constant 0 : index
    %283 = vector.load %arg24[%c18_241, %c0_242] : memref<32x192xf32, #tpu.memory_space<vmem>>, vector<2x64xf32>
    tpu.vector_store %arg24[%c18_241, %c0_242], %282 {strides = array<i32>} : memref<32x192xf32, #tpu.memory_space<vmem>>, vector<2x64xf32>,
    %284 = vector.extract_strided_slice %253 {offsets = [10, 0], sizes = [2, 64], strides = [1, 1]} : vector<16x64xf32> to vector<2x64xf32>
    %c18_243 = arith.constant 18 : index
    %c128_244 = arith.constant 128 : index
    %285 = vector.load %arg24[%c18_243, %c128_244] : memref<32x192xf32, #tpu.memory_space<vmem>>, vector<2x64xf32>
    tpu.vector_store %arg24[%c18_243, %c128_244], %284 {strides = array<i32>} : memref<32x192xf32, #tpu.memory_space<vmem>>, vector<2x64xf32>,
    %286 = vector.extract_strided_slice %253 {offsets = [10, 0], sizes = [2, 64], strides = [1, 1]} : vector<16x64xf32> to vector<2x64xf32>
    %c20_245 = arith.constant 20 : index
    %c64_246 = arith.constant 64 : index
    %287 = vector.load %arg24[%c20_245, %c64_246] : memref<32x192xf32, #tpu.memory_space<vmem>>, vector<2x64xf32>
    tpu.vector_store %arg24[%c20_245, %c64_246], %286 {strides = array<i32>} : memref<32x192xf32, #tpu.memory_space<vmem>>, vector<2x64xf32>,
    %288 = vector.extract_strided_slice %253 {offsets = [10, 0], sizes = [2, 64], strides = [1, 1]} : vector<16x64xf32> to vector<2x64xf32>
    %c22_247 = arith.constant 22 : index
    %c0_248 = arith.constant 0 : index
    %289 = vector.load %arg24[%c22_247, %c0_248] : memref<32x192xf32, #tpu.memory_space<vmem>>, vector<2x64xf32>
    tpu.vector_store %arg24[%c22_247, %c0_248], %288 {strides = array<i32>} : memref<32x192xf32, #tpu.memory_space<vmem>>, vector<2x64xf32>,
    %290 = vector.extract_strided_slice %253 {offsets = [12, 0], sizes = [2, 64], strides = [1, 1]} : vector<16x64xf32> to vector<2x64xf32>
    %c22_249 = arith.constant 22 : index
    %c128_250 = arith.constant 128 : index
    %291 = vector.load %arg24[%c22_249, %c128_250] : memref<32x192xf32, #tpu.memory_space<vmem>>, vector<2x64xf32>
    tpu.vector_store %arg24[%c22_249, %c128_250], %290 {strides = array<i32>} : memref<32x192xf32, #tpu.memory_space<vmem>>, vector<2x64xf32>,
    %292 = vector.extract_strided_slice %253 {offsets = [12, 0], sizes = [2, 64], strides = [1, 1]} : vector<16x64xf32> to vector<2x64xf32>
    %c24_251 = arith.constant 24 : index
    %c64_252 = arith.constant 64 : index
    %293 = vector.load %arg24[%c24_251, %c64_252] : memref<32x192xf32, #tpu.memory_space<vmem>>, vector<2x64xf32>
    tpu.vector_store %arg24[%c24_251, %c64_252], %292 {strides = array<i32>} : memref<32x192xf32, #tpu.memory_space<vmem>>, vector<2x64xf32>,
    %294 = vector.extract_strided_slice %253 {offsets = [12, 0], sizes = [2, 64], strides = [1, 1]} : vector<16x64xf32> to vector<2x64xf32>
    %c26_253 = arith.constant 26 : index
    %c0_254 = arith.constant 0 : index
    %295 = vector.load %arg24[%c26_253, %c0_254] : memref<32x192xf32, #tpu.memory_space<vmem>>, vector<2x64xf32>
    tpu.vector_store %arg24[%c26_253, %c0_254], %294 {strides = array<i32>} : memref<32x192xf32, #tpu.memory_space<vmem>>, vector<2x64xf32>,
    %296 = vector.extract_strided_slice %253 {offsets = [14, 0], sizes = [2, 64], strides = [1, 1]} : vector<16x64xf32> to vector<2x64xf32>
    %c26_255 = arith.constant 26 : index
    %c128_256 = arith.constant 128 : index
    %297 = vector.load %arg24[%c26_255, %c128_256] : memref<32x192xf32, #tpu.memory_space<vmem>>, vector<2x64xf32>
    tpu.vector_store %arg24[%c26_255, %c128_256], %296 {strides = array<i32>} : memref<32x192xf32, #tpu.memory_space<vmem>>, vector<2x64xf32>,
    %298 = vector.extract_strided_slice %253 {offsets = [14, 0], sizes = [2, 64], strides = [1, 1]} : vector<16x64xf32> to vector<2x64xf32>
    %c28_257 = arith.constant 28 : index
    %c64_258 = arith.constant 64 : index
    %299 = vector.load %arg24[%c28_257, %c64_258] : memref<32x192xf32, #tpu.memory_space<vmem>>, vector<2x64xf32>
    tpu.vector_store %arg24[%c28_257, %c64_258], %298 {strides = array<i32>} : memref<32x192xf32, #tpu.memory_space<vmem>>, vector<2x64xf32>,
    %300 = vector.extract_strided_slice %253 {offsets = [14, 0], sizes = [2, 64], strides = [1, 1]} : vector<16x64xf32> to vector<2x64xf32>
    %c30_259 = arith.constant 30 : index
    %c0_260 = arith.constant 0 : index
    %301 = vector.load %arg24[%c30_259, %c0_260] : memref<32x192xf32, #tpu.memory_space<vmem>>, vector<2x64xf32>
    tpu.vector_store %arg24[%c30_259, %c0_260], %300 {strides = array<i32>} : memref<32x192xf32, #tpu.memory_space<vmem>>, vector<2x64xf32>,
    %c0_261 = arith.constant 0 : index
    %c0_262 = arith.constant 0 : index
    %302 = vector.load %arg24[%c0_261, %c0_262] : memref<32x192xf32, #tpu.memory_space<vmem>>, vector<32x192xf32>
    %c0_263 = arith.constant 0 : index
    %c0_264 = arith.constant 0 : index
    %303 = vector.load %arg13[%c0_263, %c0_264] : memref<192x64xf32, #tpu.memory_space<vmem>>, vector<192x64xf32>
    %cst_265 = arith.constant dense<0.000000e+00> : vector<32x64xf32>
    %304 = tpu.matmul %302, %303, %cst_265 {dimension_numbers = #tpu.dot_dimension_numbers<[1], [0], [0], [1], [0, 0, 1, 1], [], []>} : vector<32x192xf32>, vector<192x64xf32>, vector<32x64xf32> -> vector<32x64xf32>
    %c0_266 = arith.constant 0 : index
    %c0_267 = arith.constant 0 : index
    %305 = vector.load %arg14[%c0_266, %c0_267] : memref<1x64xf32, #tpu.memory_space<vmem>>, vector<1x64xf32>
    %306 = vector.broadcast %305 : vector<1x64xf32> to vector<32x64xf32>
    %307 = arith.addf %304, %306 : vector<32x64xf32>
    %cst_268 = arith.constant 0.000000e+00 : f32
    %308 = vector.broadcast %cst_268 : f32 to vector<32x64xf32>
    %309 = arith.subf %308, %307 : vector<32x64xf32>
    %310 = math.exp %309 : vector<32x64xf32>
    %cst_269 = arith.constant 1.000000e+00 : f32
    %311 = vector.broadcast %cst_269 : f32 to vector<32x64xf32>
    %312 = arith.addf %311, %310 : vector<32x64xf32>
    %cst_270 = arith.constant 1.000000e+00 : f32
    %313 = vector.broadcast %cst_270 : f32 to vector<32x64xf32>
    %314 = arith.divf %313, %312 : vector<32x64xf32>
    %c0_271 = arith.constant 0 : index
    %c0_272 = arith.constant 0 : index
    %315 = vector.load %arg15[%c0_271, %c0_272] : memref<32x64xf32, #tpu.memory_space<vmem>>, vector<32x64xf32>
    tpu.vector_store %arg15[%c0_271, %c0_272], %314 {strides = array<i32>} : memref<32x64xf32, #tpu.memory_space<vmem>>, vector<32x64xf32>,
    return
  }
  func.func @transform_0(%arg0: i32) -> (i32, i32) {
    %c0_i32 = arith.constant 0 : i32
    %c0_i32_0 = arith.constant 0 : i32
    %c0_i32_1 = arith.constant 0 : i32
    return %c0_i32, %c0_i32_0 : i32, i32
  }
  func.func @transform_1(%arg0: i32) -> (i32, i32) {
    %c0_i32 = arith.constant 0 : i32
    %c0_i32_0 = arith.constant 0 : i32
    %c0_i32_1 = arith.constant 0 : i32
    return %c0_i32, %c0_i32_0 : i32, i32
  }
  func.func @transform_2(%arg0: i32) -> (i32, i32) {
    %c0_i32 = arith.constant 0 : i32
    %c0_i32_0 = arith.constant 0 : i32
    %c0_i32_1 = arith.constant 0 : i32
    return %c0_i32, %c0_i32_0 : i32, i32
  }
  func.func @transform_3(%arg0: i32) -> (i32, i32) {
    %c0_i32 = arith.constant 0 : i32
    %c0_i32_0 = arith.constant 0 : i32
    %c0_i32_1 = arith.constant 0 : i32
    return %c0_i32, %c0_i32_0 : i32, i32
  }
  func.func @transform_4(%arg0: i32) -> (i32, i32) {
    %c0_i32 = arith.constant 0 : i32
    %c0_i32_0 = arith.constant 0 : i32
    %c0_i32_1 = arith.constant 0 : i32
    return %c0_i32, %c0_i32_0 : i32, i32
  }
  func.func @transform_5(%arg0: i32) -> (i32, i32) {
    %c0_i32 = arith.constant 0 : i32
    %c0_i32_0 = arith.constant 0 : i32
    %c0_i32_1 = arith.constant 0 : i32
    return %c0_i32, %c0_i32_0 : i32, i32
  }
  func.func @transform_6(%arg0: i32) -> (i32, i32) {
    %c0_i32 = arith.constant 0 : i32
    %c0_i32_0 = arith.constant 0 : i32
    %c0_i32_1 = arith.constant 0 : i32
    return %c0_i32, %c0_i32_0 : i32, i32
  }
  func.func @transform_7(%arg0: i32) -> (i32, i32) {
    %c0_i32 = arith.constant 0 : i32
    %c0_i32_0 = arith.constant 0 : i32
    %c0_i32_1 = arith.constant 0 : i32
    return %c0_i32, %c0_i32_0 : i32, i32
  }
  func.func @transform_8(%arg0: i32) -> (i32, i32) {
    %c0_i32 = arith.constant 0 : i32
    %c0_i32_0 = arith.constant 0 : i32
    %c0_i32_1 = arith.constant 0 : i32
    return %c0_i32, %c0_i32_0 : i32, i32
  }
  func.func @transform_9(%arg0: i32) -> (i32, i32) {
    %c0_i32 = arith.constant 0 : i32
    %c0_i32_0 = arith.constant 0 : i32
    %c0_i32_1 = arith.constant 0 : i32
    return %c0_i32, %c0_i32_0 : i32, i32
  }
  func.func @transform_10(%arg0: i32) -> (i32, i32) {
    %c0_i32 = arith.constant 0 : i32
    %c0_i32_0 = arith.constant 0 : i32
    %c0_i32_1 = arith.constant 0 : i32
    return %c0_i32, %c0_i32_0 : i32, i32
  }
  func.func @transform_11(%arg0: i32) -> (i32, i32) {
    %c0_i32 = arith.constant 0 : i32
    %c0_i32_0 = arith.constant 0 : i32
    %c0_i32_1 = arith.constant 0 : i32
    return %c0_i32, %c0_i32_0 : i32, i32
  }
  func.func @transform_12(%arg0: i32) -> (i32, i32) {
    %c0_i32 = arith.constant 0 : i32
    %c0_i32_0 = arith.constant 0 : i32
    %c0_i32_1 = arith.constant 0 : i32
    return %c0_i32, %c0_i32_0 : i32, i32
  }
  func.func @transform_13(%arg0: i32) -> (i32, i32) {
    %c0_i32 = arith.constant 0 : i32
    %c0_i32_0 = arith.constant 0 : i32
    %c0_i32_1 = arith.constant 0 : i32
    return %c0_i32, %c0_i32_0 : i32, i32
  }
  func.func @transform_14(%arg0: i32) -> (i32, i32) {
    %c0_i32 = arith.constant 0 : i32
    %c0_i32_0 = arith.constant 0 : i32
    %c0_i32_1 = arith.constant 0 : i32
    return %c0_i32, %c0_i32_0 : i32, i32
  }
  func.func @transform_15(%arg0: i32) -> (i32, i32) {
    %c0_i32 = arith.constant 0 : i32
    %c0_i32_0 = arith.constant 0 : i32
    %c0_i32_1 = arith.constant 0 : i32
    return %c0_i32, %c0_i32_0 : i32, i32
  }
  func.func @transform_16(%arg0: i32) -> (i32, i32) {
    %c0_i32 = arith.constant 0 : i32
    %c0_i32_0 = arith.constant 0 : i32
    %c0_i32_1 = arith.constant 0 : i32
    return %c0_i32, %c0_i32_0 : i32, i32
  }
  func.func @transform_17(%arg0: i32) -> (i32, i32) {
    %c0_i32 = arith.constant 0 : i32
    %c0_i32_0 = arith.constant 0 : i32
    %c0_i32_1 = arith.constant 0 : i32
    return %c0_i32, %c0_i32_0 : i32, i32
  }
  func.func @transform_18(%arg0: i32) -> (i32, i32) {
    %c0_i32 = arith.constant 0 : i32
    %c0_i32_0 = arith.constant 0 : i32
    %c0_i32_1 = arith.constant 0 : i32
    return %c0_i32, %c0_i32_0 : i32, i32
  }
  func.func @transform_19(%arg0: i32) -> (i32, i32) {
    %c0_i32 = arith.constant 0 : i32
    %c0_i32_0 = arith.constant 0 : i32
    %c0_i32_1 = arith.constant 0 : i32
    return %c0_i32, %c0_i32_0 : i32, i32
  }
}

</mosaic_0001>

<bundles_post_ra>
// kernel: lvae_forward.1
= control target key start
LH: loop header
LB: loop body
LE: loop exit
PB: predicated region body
PF: predicated region fallthrough
CT: control target
= control target key end

     0   :  { %s2746_s0 = inlined_call_operand.vmem [shape: f32[32,64], index: 0, kind: input, shape index: {}]   ;;  %s2747_s1 = inlined_call_operand.vmem [shape: f32[2,8], index: 1, kind: input, shape index: {}]   ;;  %s2748_s2 = inlined_call_operand.vmem [shape: f32[192,64], index: 2, kind: input, shape index: {}]   ;;  %s2749_s3 = inlined_call_operand.vmem [shape: f32[1,64], index: 3, kind: input, shape index: {}]   ;;  %s2750_s4 = inlined_call_operand.vmem [shape: f32[192,64], index: 4, kind: input, shape index: {}]   ;;  %s2751_s5 = inlined_call_operand.vmem [shape: f32[1,64], index: 5, kind: input, shape index: {}]   ;;  %s2752_s6 = inlined_call_operand.vmem [shape: f32[256,16], index: 6, kind: input, shape index: {}]   ;;  %s2753_s7 = inlined_call_operand.vmem [shape: f32[1,16], index: 7, kind: input, shape index: {}]   ;;  %s2754_s8 = inlined_call_operand.vmem [shape: f32[8,256], index: 8, kind: input, shape index: {}]   ;;  %s2755_s9 = inlined_call_operand.vmem [shape: f32[1,256], index: 9, kind: input, shape index: {}]   ;;  %s2756_s10 = inlined_call_operand.vmem [shape: f32[192,64], index: 10, kind: input, shape index: {}]   ;;  %s2757_s11 = inlined_call_operand.vmem [shape: f32[1,64], index: 11, kind: input, shape index: {}]   ;;  %s2758_s12 = inlined_call_operand.vmem [shape: f32[192,64], index: 12, kind: input, shape index: {}]   ;;  %s2759_s13 = inlined_call_operand.vmem [shape: f32[1,64], index: 13, kind: input, shape index: {}]   ;;  %s2760_s14 = inlined_call_operand.vmem [shape: f32[32,64], index: 14, kind: output, shape index: {0}]   ;;  %s2761_s15 = inlined_call_operand.hbm [shape: f32[2,9], index: 15, kind: output, shape index: {1}]   ;;  %s2762_s16 = inlined_call_operand.hbm [shape: f32[2,9], index: 16, kind: output, shape index: {2}]   ;;  %s2763_s17 = inlined_call_operand.hbm [shape: f32[2,8], index: 17, kind: output, shape index: {3}]   ;;  %s2764_s18 = inlined_call_operand.hbm [shape: f32[2,9], index: 18, kind: output, shape index: {4}]   ;;  %s2765_s19 = inlined_call_operand.hbm [shape: f32[2,8], index: 19, kind: output, shape index: {5}]  }
   0x1   :  { %2768 = sst [smem:[#allocation17_spill]] %s2746_s0 }
   0x2   :  { %2769 = sst [smem:[#allocation18_spill]] %s2747_s1 }
   0x3   :  { %2770 = sst [smem:[#allocation19_spill]] %s2748_s2 }
   0x4   :  { %2771 = sst [smem:[#allocation20_spill]] %s2749_s3 }
   0x5   :  { %25 = vsyncpa [#allocation7], 0 }
   0x6   :  { %26 = vsyncpa [#allocation9], 0  ;;  %s2772_s20 = sld [smem:[#allocation17_spill]]  ;;  %s1808_s22 = smov 64   ;;  %v1809_v5 = vmov 0.0   ;;  %vm57_vm0 = vcmask 523264  }
   0x7   :  { %230 = vmatprep.subr.mxu0 %v1809_v5  ;;  %56 = vst [vmem:[#allocation2] sm:$0xff] %v1809_v5  ;;  %59 = vst [vmem:[#allocation2 + $0x10] sm:$0xff] %v1809_v5  ;;  %s2773_s27 = sld [smem:[#allocation19_spill]]  ;;  %378 = vmatprep.subr.mxu1 %v1809_v5  ;;  %vm94_vm1 = vcmask 521220   ;;  %vm113_vm2 = vcmask 523270   ;;  %vm75_vm3 = vcmask 519170  }
   0x8   :  { %307 = vst [vmem:[#allocation3] sm:$0xff] %v1809_v5  ;;  %1040 = vst [vmem:[#allocation4] sm:$0xff] %v1809_v5  ;;  %vm69_vm4 = vcmask 517120  }
   0x9   :  { %1042 = vst [vmem:[#allocation4 + $0x10] sm:$0xff] %v1809_v5  ;;  %1204 = vst [vmem:[#allocation5] sm:$0xff] %v1809_v5 }
   0xa   :  { %1206 = vst [vmem:[#allocation5 + $0x10] sm:$0xff] %v1809_v5  ;;  %1208 = vst [vmem:[#allocation5 + $0x20] sm:$0xff] %v1809_v5 }
   0xb   :  { %1210 = vst [vmem:[#allocation5 + $0x30] sm:$0xff] %v1809_v5  ;;  %58 = vst.msk [vmem:[#allocation2 + $0x8] sm:$0xff] %vm57_vm0, %v1809_v5 }
   0xc   :  { %v96_v0 = vld [vmem:[%s2772_s20 + $0x8] sm:$0x3]  ;;  %v61_v1 = vld [vmem:[%s2772_s20] sm:$0x3]  ;;  %v115_v3 = vld [vmem:[%s2772_s20 + $0xc] sm:$0x3] }
   0xd   :  { %v98_v2 = vrot.slane %v96_v0, 4  ;;  %63 = vrot.lane.b32.xlu0 %v61_v1, %s1808_s22  ;;  %v77_v4 = vld [vmem:[%s2772_s20 + $0x4] sm:$0x3]  ;;  %v208_v6 = vld [vmem:[%s2773_s27 + $0x78] sm:$0xff]  ;;  %v117_v8 = vrot.slane %v115_v3, 2  ;;  %v207_v9 = vld [vmem:[%s2773_s27 + $0x70] sm:$0xff] }
   0xe   :  { %v79_v7 = vrot.slane %v77_v4, 6  ;;  %231 = vmatpush1.msra.mxu0 %v208_v6  ;;  %v143_v10 = vld [vmem:[%s2772_s20 + $0x14] sm:$0x3]  ;;  %v206_v11 = vld [vmem:[%s2773_s27 + $0x68] sm:$0xff]  ;;  %v160_v12 = vld [vmem:[%s2772_s20 + $0x18] sm:$0x3] }
   0xf   :  { %99 = vrot.lane.b32.xlu1 %v98_v2, %s1808_s22  ;;  %232 = vmatprep.subr.mxu0 %v1809_v5  ;;  %v205_v13 = vld [vmem:[%s2773_s27 + $0x60] sm:$0xff]  ;;  %v130_v14 = vld [vmem:[%s2772_s20 + $0x10] sm:$0x3]  ;;  %v145_v15 = vrot.slane %v143_v10, 6  ;;  %v204_v16 = vld [vmem:[%s2773_s27 + $0x58] sm:$0xff]  ;;  %v162_v18 = vrot.slane %v160_v12, 4 }
  0x10   :  { %233 = vmatpush1.msra.mxu0 %v207_v9  ;;  %v177_v17 = vld [vmem:[%s2772_s20 + $0x1c] sm:$0x3]  ;;  %60 = vst.msk [vmem:[#allocation2 + $0x18] sm:$0xff] %vm57_vm0, %v1809_v5  ;;  %308 = vst.msk [vmem:[#allocation3 + $0x8] sm:$0xff] %vm57_vm0, %v1809_v5  ;;  %v203_v19 = vld [vmem:[%s2773_s27 + $0x50] sm:$0xff] }
  0x11   :  { %80 = vrot.lane.b32.xlu0 %v79_v7, %s1808_s22  ;;  %234 = vmatprep.subr.mxu0 %v1809_v5  ;;  %1041 = vst.msk [vmem:[#allocation4 + $0x8] sm:$0xff] %vm57_vm0, %v1809_v5  ;;  %1043 = vst.msk [vmem:[#allocation4 + $0x18] sm:$0xff] %vm57_vm0, %v1809_v5  ;;  %v90_v20 = vld [vmem:[%s2772_s20 + $0x6] sm:$0x3]  ;;  %v109_v22 = vld [vmem:[%s2772_s20 + $0xa] sm:$0x3] }
  0x12   :  { %235 = vmatpush1.msra.mxu0 %v206_v11  ;;  %1205 = vst.msk [vmem:[#allocation5 + $0x8] sm:$0xff] %vm57_vm0, %v1809_v5  ;;  %1207 = vst.msk [vmem:[#allocation5 + $0x18] sm:$0xff] %vm57_vm0, %v1809_v5  ;;  %v92_v21 = vrot.slane %v90_v20, 4  ;;  %v71_v23 = vld [vmem:[%s2772_s20 + $0x2] sm:$0x3]  ;;  %v179_v24 = vrot.slane %v177_v17, 2 }
  0x13   :  { %118 = vrot.lane.b32.xlu1 %v117_v8, %s1808_s22  ;;  %236 = vmatprep.subr.mxu0 %v1809_v5  ;;  %1209 = vst.msk [vmem:[#allocation5 + $0x28] sm:$0xff] %vm57_vm0, %v1809_v5  ;;  %1211 = vst.msk [vmem:[#allocation5 + $0x38] sm:$0xff] %vm57_vm0, %v1809_v5  ;;  %v202_v25 = vld [vmem:[%s2773_s27 + $0x48] sm:$0xff]  ;;  %v111_v26 = vrot.slane %v109_v22, 2  ;;  %v73_v27 = vrot.slane %v71_v23, 6  ;;  %v201_v29 = vld [vmem:[%s2773_s27 + $0x40] sm:$0xff] }
  0x14   :  { %237 = vmatpush1.msra.mxu0 %v205_v13  ;;  %v138_v28 = vld [vmem:[%s2772_s20 + $0x12] sm:$0x3]  ;;  %95 = vst.msk [vmem:[#allocation2] sm:$0x30] %vm94_vm1, %v92_v21  ;;  %v68_v31 = vld [vmem:[%s2772_s20 + $0x2] sm:$0x3] }
  0x15   :  { %132 = vrot.lane.b32.xlu0 %v130_v14, %s1808_s22  ;;  %238 = vmatprep.subr.mxu0 %v1809_v5  ;;  %v140_v30 = vrot.slane %v138_v28, 6  ;;  %v85_v32 = vld [vmem:[%s2772_s20 + $0x6] sm:$0x3]  ;;  %v200_v33 = vld [vmem:[%s2773_s27 + $0x38] sm:$0xff]  ;;  %114 = vst.msk [vmem:[#allocation2] sm:$0xc0] %vm113_vm2, %v111_v26 }
  0x16   :  { %239 = vmatpush1.msra.mxu0 %v204_v16  ;;  %76 = vst.msk [vmem:[#allocation2] sm:$0xc] %vm75_vm3, %v73_v27  ;;  %v87_v34 = vrot.slane %v85_v32, 6  ;;  %v104_v35 = vld [vmem:[%s2772_s20 + $0xa] sm:$0x3]  ;;  %v199_v48 = vld [vmem:[%s2773_s27 + $0x30] sm:$0xff] }
  0x17   :  { %146 = vrot.lane.b32.xlu1 %v145_v15, %s1808_s22  ;;  %240 = vmatprep.subr.mxu0 %v1809_v5  ;;  %v123_v36 = vld [vmem:[%s2772_s20 + $0xe] sm:$0x3]  ;;  %70 = vst.msk [vmem:[#allocation2 + $0x8] sm:$0x3] %vm69_vm4, %v68_v31  ;;  %v106_v37 = vrot.slane %v104_v35, 4 }
  0x18   :  { %241 = vmatpush1.msra.mxu0 %v203_v19  ;;  %142 = vst.msk [vmem:[#allocation2 + $0x10] sm:$0xc] %vm75_vm3, %v140_v30  ;;  %v125_v38 = vrot.slane %v123_v36, 2  ;;  %v128_v39 = vld [vmem:[%s2772_s20 + $0xe] sm:$0x3] }
  0x19   :  { %163 = vrot.lane.b32.xlu0 %v162_v18, %s1808_s22  ;;  %242 = vmatprep.subr.mxu0 %v1809_v5  ;;  %v136_v40 = vld [vmem:[%s2772_s20 + $0x12] sm:$0x3]  ;;  %v150_v41 = vld [vmem:[%s2772_s20 + $0x16] sm:$0x3]  ;;  %v167_v42 = vld [vmem:[%s2772_s20 + $0x1a] sm:$0x3] }
  0x1a   :  { %243 = vmatpush1.msra.mxu0 %v202_v25  ;;  %v184_v43 = vld [vmem:[%s2772_s20 + $0x1e] sm:$0x3]  ;;  %89 = vst.msk [vmem:[#allocation2 + $0x8] sm:$0xc] %vm75_vm3, %v87_v34  ;;  %v152_v44 = vrot.slane %v150_v41, 6  ;;  %v169_v45 = vrot.slane %v167_v42, 4 }
  0x1b   :  { %180 = vrot.lane.b32.xlu1 %v179_v24, %s1808_s22  ;;  %244 = vmatprep.subr.mxu0 %v1809_v5  ;;  %129 = vst.msk [vmem:[#allocation2 + $0x10] sm:$0x3] %vm69_vm4, %v128_v39  ;;  %137 = vst.msk [vmem:[#allocation2 + $0x18] sm:$0x3] %vm69_vm4, %v136_v40  ;;  %v186_v46 = vrot.slane %v184_v43, 2 }
  0x1c   :  { %245 = vmatpush1.msra.mxu0 %v201_v29  ;;  %108 = vst.msk [vmem:[#allocation2 + $0x8] sm:$0x30] %vm94_vm1, %v106_v37  ;;  %v172_v47 = vld [vmem:[%s2772_s20 + $0x1a] sm:$0x3]  ;;  %v155_v50 = vld [vmem:[%s2772_s20 + $0x16] sm:$0x3] }
  0x1d   :  { %127 = vst.msk [vmem:[#allocation2 + $0x8] sm:$0xc0] %vm113_vm2, %v125_v38  ;;  %246 = vmatprep.subr.mxu0 %v1809_v5  ;;  %v174_v49 = vrot.slane %v172_v47, 2  ;;  %188 = vst.msk [vmem:[#allocation2 + $0x18] sm:$0xc0] %vm113_vm2, %v186_v46  ;;  %v157_v51 = vrot.slane %v155_v50, 4 }
  0x1e   :  { %247 = vmatpush1.msra.mxu0 %v200_v33  ;;  %154 = vst.msk [vmem:[#allocation2 + $0x18] sm:$0xc] %vm75_vm3, %v152_v44 }
  0x1f   :  { %171 = vst.msk [vmem:[#allocation2 + $0x18] sm:$0x30] %vm94_vm1, %v169_v45 }
  0x20   :  { %27 = vsyncpa [#allocation12], 0  ;;  %248 = vmatprep.subr.mxu0 %v1809_v5  ;;  %v198_v52 = vld [vmem:[%s2773_s27 + $0x28] sm:$0xff]  ;;  %176 = vst.msk [vmem:[#allocation2 + $0x10] sm:$0xc0] %vm113_vm2, %v174_v49  ;;  %v197_v53 = vld [vmem:[%s2773_s27 + $0x20] sm:$0xff] }
  0x21   :  { %249 = vmatpush1.msra.mxu0 %v199_v48  ;;  %159 = vst.msk [vmem:[#allocation2 + $0x10] sm:$0x30] %vm94_vm1, %v157_v51  ;;  %v196_v54 = vld [vmem:[%s2773_s27 + $0x18] sm:$0xff]  ;;  %v195_v56 = vld [vmem:[%s2773_s27 + $0x10] sm:$0xff]  ;;  %v194_v57 = vld [vmem:[%s2773_s27 + $0x8] sm:$0xff]  ;;  %vm66_vm5 = vcmask 1041920  }
  0x22   :  { %250 = vmatprep.subr.mxu0 %v1809_v5  ;;  %v193_v58 = vld [vmem:[%s2773_s27] sm:$0xff]  ;;  %v216_v59 = vld [vmem:[%s2773_s27 + $0xb8] sm:$0xff]  ;;  %v215_v60 = vld [vmem:[%s2773_s27 + $0xb0] sm:$0xff]  ;;  %vm102_vm6 = vcmask 1046020   ;;  %vm83_vm7 = vcmask 1043970   ;;  %vm121_vm8 = vcmask 1048070  }
  0x23   :  { %251 = vmatpush1.msra.mxu0 %v198_v52  ;;  %v214_v61 = vld [vmem:[%s2773_s27 + $0xa8] sm:$0xff]  ;;  %v213_v62 = vld [vmem:[%s2773_s27 + $0xa0] sm:$0xff]  ;;  %v212_v63 = vld [vmem:[%s2773_s27 + $0x98] sm:$0xff]  ;;  %s2774_s24 = sld [smem:[#allocation20_spill]]  ;;  %vm1810_vm9 = vmmov 0   ;;  %s1811_s25 = smov 8  }
  0x24   :  { %252 = vmatprep.subr.mxu0 %v1809_v5  ;;  %v190_v55 = vld [vmem:[#allocation2 + $0x8] sm:$0xff]  ;;  %v211_v0 = vld [vmem:[%s2773_s27 + $0x90] sm:$0xff]  ;;  %v209_v2 = vld [vmem:[%s2773_s27 + $0x80] sm:$0xff]  ;;  %vm807_vm10 = vcmask 58368   ;;  %vm895_vm15 = vcmask 1024   ;;  %s1816_s2 = smov [#allocation11]  }
  0x25   :  { %253 = vmatpush1.msra.mxu0 %v197_v53  ;;  %1510 = vmatprep.mubr.msk.f32.mxu0 %vm57_vm0, %v190_v55  ;;  %v210_v1 = vld [vmem:[%s2773_s27 + $0x88] sm:$0xff]  ;;  %v359_v15 = vld [vmem:[%s2750_s4 + $0x78] sm:$0xff]  ;;  %v358_v16 = vld [vmem:[%s2750_s4 + $0x70] sm:$0xff] }
  0x26   :  { %254 = vmatprep.subr.mxu0 %v1809_v5  ;;  %v192_v11 = vld [vmem:[#allocation2 + $0x18] sm:$0xff]  ;;  %379 = vmatpush1.msra.mxu1 %v359_v15  ;;  %v357_v17 = vld [vmem:[%s2750_s4 + $0x68] sm:$0xff]  ;;  %v356_v18 = vld [vmem:[%s2750_s4 + $0x60] sm:$0xff] }
  0x27   :  { %255 = vmatpush1.msra.mxu0 %v196_v54  ;;  %380 = vmatprep.subr.mxu1 %v1809_v5  ;;  %v355_v19 = vld [vmem:[%s2750_s4 + $0x58] sm:$0xff]  ;;  %v354_v20 = vld [vmem:[%s2750_s4 + $0x50] sm:$0xff]  ;;  %v353_v21 = vld [vmem:[%s2750_s4 + $0x48] sm:$0xff] }
  0x28   :  { %256 = vmatprep.subr.mxu0 %v1809_v5  ;;  %381 = vmatpush1.msra.mxu1 %v358_v16  ;;  %v352_v22 = vld [vmem:[%s2750_s4 + $0x40] sm:$0xff]  ;;  %v351_v23 = vld [vmem:[%s2750_s4 + $0x38] sm:$0xff]  ;;  %v350_v24 = vld [vmem:[%s2750_s4 + $0x30] sm:$0xff] }
  0x29   :  { %257 = vmatpush1.msra.mxu0 %v195_v56  ;;  %382 = vmatprep.subr.mxu1 %v1809_v5  ;;  %v349_v25 = vld [vmem:[%s2750_s4 + $0x28] sm:$0xff]  ;;  %v348_v26 = vld [vmem:[%s2750_s4 + $0x20] sm:$0xff]  ;;  %v347_v27 = vld [vmem:[%s2750_s4 + $0x18] sm:$0xff] }
  0x2a   :  { %258 = vmatprep.subr.mxu0 %v1809_v5  ;;  %383 = vmatpush1.msra.mxu1 %v357_v17  ;;  %v346_v28 = vld [vmem:[%s2750_s4 + $0x10] sm:$0xff]  ;;  %v345_v29 = vld [vmem:[%s2750_s4 + $0x8] sm:$0xff]  ;;  %v344_v30 = vld [vmem:[%s2750_s4] sm:$0xff] }
  0x2b   :  { %259 = vmatpush1.msra.mxu0 %v194_v57  ;;  %384 = vmatprep.subr.mxu1 %v1809_v5  ;;  %v367_v31 = vld [vmem:[%s2750_s4 + $0xb8] sm:$0xff]  ;;  %v366_v32 = vld [vmem:[%s2750_s4 + $0xb0] sm:$0xff]  ;;  %v365_v33 = vld [vmem:[%s2750_s4 + $0xa8] sm:$0xff] }
  0x2c   :  { %260 = vmatprep.subr.mxu0 %v1809_v5  ;;  %385 = vmatpush1.msra.mxu1 %v356_v18  ;;  %v1509_v34 = vld [vmem:[%s2774_s24] ss:$0 sm:$0xff]  ;;  %v363_v39 = vld [vmem:[%s2750_s4 + $0x98] sm:$0xff]  ;;  %v362_v40 = vld [vmem:[%s2750_s4 + $0x90] sm:$0xff]  ;;  %s2775_s24 = sld [smem:[#allocation18_spill]] }
  0x2d   :  { %261 = vmatpush1.msra.mxu0 %v193_v58  ;;  %386 = vmatprep.subr.mxu1 %v1809_v5  ;;  %v364_v35 = vld [vmem:[%s2750_s4 + $0xa0] sm:$0xff]  ;;  %v361_v42 = vld [vmem:[%s2750_s4 + $0x88] sm:$0xff]  ;;  %v457_v49 = vld [vmem:[%s2752_s6 + $0x38] sm:$0xff] }
  0x2e   :  { %278 = vmatprep.subr.mxu0 %v1809_v5  ;;  %387 = vmatpush1.msra.mxu1 %v355_v19  ;;  %v360_v45 = vld [vmem:[%s2750_s4 + $0x80] sm:$0xff]  ;;  %v456_v50 = vld [vmem:[%s2752_s6 + $0x30] sm:$0xff]  ;;  %v455_v54 = vld [vmem:[%s2752_s6 + $0x28] sm:$0xff]  ;;  %s1475_s4 = sshll.u32 %s1816_s2, 4  ;;  %s1476_s4 = int_to_ptr.vmem [resolvable:$true] %s1475_s4 }
  0x2f   :  { %279 = vmatpush2.msra.mxu0 %v216_v59  ;;  %388 = vmatprep.subr.mxu1 %v1809_v5  ;;  %v454_v55 = vld [vmem:[%s2752_s6 + $0x20] sm:$0xff]  ;;  %v453_v56 = vld [vmem:[%s2752_s6 + $0x18] sm:$0xff]  ;;  %v452_v57 = vld [vmem:[%s2752_s6 + $0x10] sm:$0xff] }
  0x30   :  { %280 = vmatprep.subr.mxu0 %v1809_v5  ;;  %389 = vmatpush1.msra.mxu1 %v354_v20  ;;  %v627_v17 = vld [vmem:[%s2752_s6 + $0xb8] sm:$0xff]  ;;  %v626_v19 = vld [vmem:[%s2752_s6 + $0xb0] sm:$0xff] }
  0x31   :  { %281 = vmatpush2.msra.mxu0 %v215_v60  ;;  %390 = vmatprep.subr.mxu1 %v1809_v5  ;;  %v709_v20 = vld [vmem:[%s2752_s6 + $0xf8] sm:$0xff] }
  0x32   :  { %282 = vmatprep.subr.mxu0 %v1809_v5  ;;  %391 = vmatpush1.msra.mxu1 %v353_v21  ;;  %v625_v21 = vld [vmem:[%s2752_s6 + $0xa8] sm:$0xff] }
  0x33   :  { %283 = vmatpush2.msra.mxu0 %v214_v61  ;;  %392 = vmatprep.subr.mxu1 %v1809_v5 }
  0x34   :  { %284 = vmatprep.subr.mxu0 %v1809_v5  ;;  %393 = vmatpush1.msra.mxu1 %v352_v22  ;;  %v708_v22 = vld [vmem:[%s2752_s6 + $0xf0] sm:$0xff] }
  0x35   :  { %285 = vmatpush2.msra.mxu0 %v213_v62  ;;  %394 = vmatprep.subr.mxu1 %v1809_v5 }
  0x36   :  { %286 = vmatprep.subr.mxu0 %v1809_v5  ;;  %395 = vmatpush1.msra.mxu1 %v351_v23  ;;  %v624_v23 = vld [vmem:[%s2752_s6 + $0xa0] sm:$0xff] }
  0x37   :  { %287 = vmatpush2.msra.mxu0 %v212_v63  ;;  %396 = vmatprep.subr.mxu1 %v1809_v5  ;;  %v545_v63 = vld [vmem:[%s2752_s6 + $0x78] sm:$0xff] }
  0x38   :  { %288 = vmatprep.subr.mxu0 %v1809_v5  ;;  %397 = vmatpush1.msra.mxu1 %v350_v24  ;;  %v707_v24 = vld [vmem:[%s2752_s6 + $0xe8] sm:$0xff] }
  0x39   :  { %289 = vmatpush2.msra.mxu0 %v211_v0  ;;  %398 = vmatprep.subr.mxu1 %v1809_v5 }
  0x3a   :  { %290 = vmatprep.subr.mxu0 %v1809_v5  ;;  %399 = vmatpush1.msra.mxu1 %v349_v25  ;;  %v623_v25 = vld [vmem:[%s2752_s6 + $0x98] sm:$0xff] }
  0x3b   :  { %291 = vmatpush2.msra.mxu0 %v210_v1  ;;  %400 = vmatprep.subr.mxu1 %v1809_v5  ;;  %v544_v1 = vld [vmem:[%s2752_s6 + $0x70] sm:$0xff] }
  0x3c   :  { %292 = vmatprep.subr.mxu0 %v1809_v5  ;;  %401 = vmatpush1.msra.mxu1 %v348_v26  ;;  %v706_v26 = vld [vmem:[%s2752_s6 + $0xe0] sm:$0xff] }
  0x3d   :  { %293 = vmatpush2.msra.mxu0 %v209_v2  ;;  %402 = vmatprep.subr.mxu1 %v1809_v5  ;;  %v543_v2 = vld [vmem:[%s2752_s6 + $0x68] sm:$0xff] }
  0x3e   :  { %1565 = vmatprep.subr.mxu0 %v1809_v5  ;;  %403 = vmatpush1.msra.mxu1 %v347_v27  ;;  %v622_v27 = vld [vmem:[%s2752_s6 + $0x90] sm:$0xff] }
  0x3f   :  { %404 = vmatprep.subr.mxu1 %v1809_v5 }
  0x40   :  { %405 = vmatpush1.msra.mxu1 %v346_v28  ;;  %v705_v28 = vld [vmem:[%s2752_s6 + $0xd8] sm:$0xff] }
  0x41   :  { %406 = vmatprep.subr.mxu1 %v1809_v5 }
  0x42   :  { %407 = vmatpush1.msra.mxu1 %v345_v29  ;;  %v621_v29 = vld [vmem:[%s2752_s6 + $0x88] sm:$0xff] }
  0x43   :  { %408 = vmatprep.subr.mxu1 %v1809_v5 }
  0x44   :  { %409 = vmatpush1.msra.mxu1 %v344_v30  ;;  %v704_v30 = vld [vmem:[%s2752_s6 + $0xd0] sm:$0xff] }
  0x45   :  { %426 = vmatprep.subr.mxu1 %v1809_v5 }
  0x46   :  { %427 = vmatpush2.msra.mxu1 %v367_v31  ;;  %v620_v31 = vld [vmem:[%s2752_s6 + $0x80] sm:$0xff] }
  0x47   :  { %428 = vmatprep.subr.mxu1 %v1809_v5 }
  0x48   :  { %429 = vmatpush2.msra.mxu1 %v366_v32  ;;  %v703_v32 = vld [vmem:[%s2752_s6 + $0xc8] sm:$0xff] }
  0x49   :  { %430 = vmatprep.subr.mxu1 %v1809_v5 }
  0x4a   :  { %431 = vmatpush2.msra.mxu1 %v365_v33 }
  0x4b   :  { %432 = vmatprep.subr.mxu1 %v1809_v5 }
  0x4c   :  { %433 = vmatpush2.msra.mxu1 %v364_v35 }
  0x4d   :  { %434 = vmatprep.subr.mxu1 %v1809_v5 }
  0x4e   :  { %435 = vmatpush2.msra.mxu1 %v363_v39 }
  0x4f   :  { %436 = vmatprep.subr.mxu1 %v1809_v5 }
  0x50   :  { %437 = vmatpush2.msra.mxu1 %v362_v40  ;;  %v1515_v40 = vld [vmem:[%s2753_s7] ss:$0 sm:$0xff]  ;;  %s1812_s7 = smov 120  }
  0x51   :  { %438 = vmatprep.subr.mxu1 %v1809_v5 }
  0x52   :  { %439 = vmatpush2.msra.mxu1 %v361_v42 }
  0x53   :  { %440 = vmatprep.subr.mxu1 %v1809_v5 }
  0x54   :  { %441 = vmatpush2.msra.mxu1 %v360_v45 }
  0x55   :  { %1584 = vmatprep.subr.mxu1 %v1809_v5 }
  0x7f   :  { %v64_v3 = vpop.permute.xlu0 %63 }
  0x80   :  { %67 = vst.msk [vmem:[#allocation2] sm:$0x3] %vm66_vm5, %v64_v3  ;;  %v542_v3 = vld [vmem:[%s2752_s6 + $0x60] sm:$0xff] }
  0x81   :  { %v100_v4 = vpop.permute.xlu1 %99 }
  0x82   :  { %103 = vst.msk [vmem:[#allocation2] sm:$0x30] %vm102_vm6, %v100_v4  ;;  %v541_v4 = vld [vmem:[%s2752_s6 + $0x58] sm:$0xff] }
  0x83   :  { %v81_v6 = vpop.permute.xlu0 %80 }
  0x84   :  { %84 = vst.msk [vmem:[#allocation2] sm:$0xc] %vm83_vm7, %v81_v6  ;;  %v451_v6 = vld [vmem:[%s2752_s6 + $0x8] sm:$0xff] }
  0x85   :  { %v119_v7 = vpop.permute.xlu1 %118 }
  0x86   :  { %122 = vst.msk [vmem:[#allocation2] sm:$0xc0] %vm121_vm8, %v119_v7  ;;  %v540_v7 = vld [vmem:[%s2752_s6 + $0x50] sm:$0xff] }
  0x87   :  { %v133_v8 = vpop.permute.xlu0 %132 }
  0x88   :  { %135 = vst.msk [vmem:[#allocation2 + $0x10] sm:$0x3] %vm66_vm5, %v133_v8  ;;  %v450_v8 = vld [vmem:[%s2752_s6] sm:$0xff] }
  0x89   :  { %v147_v9 = vpop.permute.xlu1 %146 }
  0x8a   :  { %149 = vst.msk [vmem:[#allocation2 + $0x10] sm:$0xc] %vm83_vm7, %v147_v9  ;;  %v539_v9 = vld [vmem:[%s2752_s6 + $0x48] sm:$0xff] }
  0x8b   :  { %v164_v10 = vpop.permute.xlu0 %163 }
  0x8c   :  { %166 = vst.msk [vmem:[#allocation2 + $0x10] sm:$0x30] %vm102_vm6, %v164_v10  ;;  %v538_v10 = vld [vmem:[%s2752_s6 + $0x40] sm:$0xff] }
  0x8d   :  { %v181_v12 = vpop.permute.xlu1 %180  ;;  %v189_v13 = vld [vmem:[#allocation2] sm:$0xff] }
  0x8e   :  { %183 = vst.msk [vmem:[#allocation2 + $0x10] sm:$0xc0] %vm121_vm8, %v181_v12  ;;  %295 = vmatmul.mubr.f32.vlgmr.msra.gmra.mxu0 %v189_v13  ;;  %v1512_v12 = vld [vmem:[%s2751_s5] ss:$0 sm:$0xff] }
  0x8f   :  { %1511 = vmatprep.mubr.msk.f32.mxu0 %vm57_vm0, %v192_v11  ;;  %1566 = vmatpush3.msra.mxu0 %v457_v49  ;;  %v793_v11 = vld [vmem:[%s2775_s24] sm:$0x3] }
  0x90   :  { %1567 = vmatprep.subr.mxu0 %v1809_v5 }
  0x91   :  { %1568 = vmatpush3.msra.mxu0 %v456_v50 }
  0x92   :  { %1569 = vmatprep.subr.mxu0 %v1809_v5 }
  0x93   :  { %1570 = vmatpush3.msra.mxu0 %v455_v54 }
  0x94   :  { %1571 = vmatprep.subr.mxu0 %v1809_v5 }
  0x95   :  { %v191_v14 = vld [vmem:[#allocation2 + $0x10] sm:$0xff]  ;;  %1572 = vmatpush3.msra.mxu0 %v454_v55 }
  0x96   :  { %300 = vmatmul.mubr.f32.gmra.mxu0 %v191_v14  ;;  %1573 = vmatprep.subr.mxu0 %v1809_v5 }
  0x97   :  { %1574 = vmatpush3.msra.mxu0 %v453_v56  ;;  %1581 = vmatprep.mubr.msk.f32.mxu0 %vm1810_vm9, %v1809_v5 }
  0x98   :  { %1575 = vmatprep.subr.mxu0 %v1809_v5 }
  0x99   :  { %1576 = vmatpush3.msra.mxu0 %v452_v57 }
  0x9a   :  { %1577 = vmatprep.subr.mxu0 %v1809_v5 }
  0x9b   :  { %1578 = vmatpush3.msra.mxu0 %v451_v6 }
  0x9c   :  { %1579 = vmatprep.subr.mxu0 %v1809_v5 }
  0x9d   :  { %1580 = vmatpush3.msra.mxu0 %v450_v8 }
  0x9e   :  { %1603 = vmatprep.subr.mxu0 %v1809_v5 }
 0x14e   :  { %v296_v36 = vpop.f32.mrf.mxu0 }
 0x14f   :  { %v297_v37 = vadd.f32 %v1509_v34, %v296_v36 }
 0x150   :  { %v298_v38 = vpop.f32.mrf.mxu0 }
 0x151   :  { %v305_v41 = vmax.f32 %v297_v37, 0.0 }
 0x153   :  { %v322_v43 = vrot.slane %v305_v41, 4  ;;  %317 = vst.msk [vmem:[#allocation3] sm:$0xc] %vm75_vm3, %v305_v41  ;;  %310 = vrot.lane.b32.xlu0 %v305_v41, %s1808_s22  ;;  %v314_v44 = vrot.slane %v305_v41, 2 }
 0x155   :  { %324 = vst.msk [vmem:[#allocation3 + $0x8] sm:$0xc] %vm75_vm3, %v322_v43  ;;  %318 = vrot.lane.b32.xlu1 %v314_v44, %s1808_s22 }
 0x156   :  { %316 = vst.msk [vmem:[#allocation3 + $0x8] sm:$0x3] %vm69_vm4, %v314_v44  ;;  %v301_v46 = vpop.f32.mrf.mxu0 }
 0x157   :  { %325 = vst.msk [vmem:[#allocation3] sm:$0x30] %vm94_vm1, %v314_v44  ;;  %v302_v47 = vadd.f32 %v1509_v34, %v301_v46  ;;  %v702_v34 = vld [vmem:[%s2752_s6 + $0xc0] sm:$0xff] }
 0x158   :  { %v303_v48 = vpop.f32.mrf.mxu0 }
 0x159   :  { %v306_v51 = vmax.f32 %v302_v47, 0.0 }
 0x15b   :  { %341 = vst.msk [vmem:[#allocation3 + $0x8] sm:$0xc0] %vm113_vm2, %v306_v51  ;;  %v327_v52 = vrot.slane %v306_v51, 4  ;;  %v332_v53 = vrot.slane %v306_v51, 6 }
 0x15d   :  { %328 = vrot.lane.b32.xlu0 %v327_v52, %s1808_s22  ;;  %336 = vst.msk [vmem:[#allocation3] sm:$0xc0] %vm113_vm2, %v327_v52  ;;  %337 = vrot.lane.b32.xlu1 %v332_v53, %s1808_s22 }
 0x15e   :  { %334 = vst.msk [vmem:[#allocation3 + $0x8] sm:$0x30] %vm94_vm1, %v332_v53 }
 0x161   :  { %802 = vrot.lane.b32.xlu1 %v793_v11, %s1811_s25 }
 0x165   :  { %v343_v58 = vld [vmem:[#allocation3 + $0x8] sm:$0xff] }
 0x166   :  { %1513 = vmatprep.mubr.msk.f32.mxu1 %vm57_vm0, %v343_v58 }
 0x1c5   :  { %v311_v59 = vpop.permute.xlu0 %310 }
 0x1c6   :  { %313 = vst.msk [vmem:[#allocation3] sm:$0x3] %vm66_vm5, %v311_v59 }
 0x1c7   :  { %v319_v60 = vpop.permute.xlu1 %318 }
 0x1c8   :  { %321 = vst.msk [vmem:[#allocation3] sm:$0xc] %vm83_vm7, %v319_v60 }
 0x1cf   :  { %v329_v61 = vpop.permute.xlu0 %328  ;;  %v338_v62 = vpop.permute.xlu1 %337 }
 0x1d0   :  { %331 = vst.msk [vmem:[#allocation3] sm:$0x30] %vm102_vm6, %v329_v61 }
 0x1d1   :  { %340 = vst.msk [vmem:[#allocation3] sm:$0xc0] %vm121_vm8, %v338_v62 }
 0x1d3   :  { %v803_v61 = vpop.permute.xlu1 %802 }
 0x1d8   :  { %v342_v0 = vld [vmem:[#allocation3] sm:$0xff] }
 0x1d9   :  { %443 = vmatmul.mubr.f32.vlgmr.msra.gmra.mxu1 %v342_v0 }
 0x1da   :  { %1585 = vmatpush3.msra.mxu1 %v545_v63  ;;  %1600 = vmatprep.mubr.msk.f32.mxu1 %vm1810_vm9, %v1809_v5 }
 0x1db   :  { %1586 = vmatprep.subr.mxu1 %v1809_v5 }
 0x1dc   :  { %1587 = vmatpush3.msra.mxu1 %v544_v1 }
 0x1dd   :  { %1588 = vmatprep.subr.mxu1 %v1809_v5 }
 0x1de   :  { %1589 = vmatpush3.msra.mxu1 %v543_v2 }
 0x1df   :  { %1590 = vmatprep.subr.mxu1 %v1809_v5 }
 0x1e0   :  { %1591 = vmatpush3.msra.mxu1 %v542_v3 }
 0x1e1   :  { %1592 = vmatprep.subr.mxu1 %v1809_v5 }
 0x1e2   :  { %1593 = vmatpush3.msra.mxu1 %v541_v4 }
 0x1e3   :  { %1594 = vmatprep.subr.mxu1 %v1809_v5 }
 0x1e4   :  { %1595 = vmatpush3.msra.mxu1 %v540_v7 }
 0x1e5   :  { %1596 = vmatprep.subr.mxu1 %v1809_v5 }
 0x1e6   :  { %1597 = vmatpush3.msra.mxu1 %v539_v9 }
 0x1e7   :  { %1598 = vmatprep.subr.mxu1 %v1809_v5 }
 0x1e8   :  { %1599 = vmatpush3.msra.mxu1 %v538_v10 }
 0x1e9   :  { %1622 = vmatprep.subr.mxu1 %v1809_v5 }
 0x299   :  { %v444_v13 = vpop.f32.mrf.mxu1 }
 0x29a   :  { %v445_v14 = vadd.f32 %v1512_v12, %v444_v13 }
 0x29b   :  { %v446_v15 = vpop.f32.mrf.mxu1 }
 0x29c   :  { %v448_v16 = vmax.f32 %v445_v14, 0.0 }
 0x29e   :  { %v546_v18 = vrot.slane %v448_v16, 2  ;;  %1582 = vmatmul.mubr.msk.f32.vlgmr.msra.gmra.mxu0 %vm57_vm0, %v448_v16  ;;  %v628_v33 = vrot.slane %v448_v16, 4  ;;  %v710_v35 = vrot.slane %v448_v16, 6 }
 0x29f   :  { %1604 = vmatpush3.msra.mxu0 %v627_v17  ;;  %1619 = vmatprep.mubr.msk.f32.mxu0 %vm1810_vm9, %v1809_v5 }
 0x2a0   :  { %1605 = vmatprep.subr.mxu0 %v1809_v5  ;;  %1601 = vmatmul.mubr.msk.f32.vlgmr.msra.gmra.mxu1 %vm57_vm0, %v546_v18 }
 0x2a1   :  { %1606 = vmatpush3.msra.mxu0 %v626_v19  ;;  %1623 = vmatpush3.msra.mxu1 %v709_v20 }
 0x2a2   :  { %1607 = vmatprep.subr.mxu0 %v1809_v5  ;;  %1624 = vmatprep.subr.mxu1 %v1809_v5 }
 0x2a3   :  { %1608 = vmatpush3.msra.mxu0 %v625_v21  ;;  %1625 = vmatpush3.msra.mxu1 %v708_v22 }
 0x2a4   :  { %1609 = vmatprep.subr.mxu0 %v1809_v5  ;;  %1626 = vmatprep.subr.mxu1 %v1809_v5 }
 0x2a5   :  { %1610 = vmatpush3.msra.mxu0 %v624_v23  ;;  %1627 = vmatpush3.msra.mxu1 %v707_v24 }
 0x2a6   :  { %1611 = vmatprep.subr.mxu0 %v1809_v5  ;;  %1628 = vmatprep.subr.mxu1 %v1809_v5 }
 0x2a7   :  { %1612 = vmatpush3.msra.mxu0 %v623_v25  ;;  %1629 = vmatpush3.msra.mxu1 %v706_v26 }
 0x2a8   :  { %1613 = vmatprep.subr.mxu0 %v1809_v5  ;;  %1630 = vmatprep.subr.mxu1 %v1809_v5 }
 0x2a9   :  { %1614 = vmatpush3.msra.mxu0 %v622_v27  ;;  %1631 = vmatpush3.msra.mxu1 %v705_v28 }
 0x2aa   :  { %1615 = vmatprep.subr.mxu0 %v1809_v5  ;;  %1632 = vmatprep.subr.mxu1 %v1809_v5 }
 0x2ab   :  { %1616 = vmatpush3.msra.mxu0 %v621_v29  ;;  %1633 = vmatpush3.msra.mxu1 %v704_v30 }
 0x2ac   :  { %1617 = vmatprep.subr.mxu0 %v1809_v5  ;;  %1634 = vmatprep.subr.mxu1 %v1809_v5 }
 0x2ad   :  { %1618 = vmatpush3.msra.mxu0 %v620_v31  ;;  %1635 = vmatpush3.msra.mxu1 %v703_v32 }
 0x2ae   :  { %1620 = vmatmul.mubr.msk.f32.vlgmr.msra.gmra.mxu0 %vm57_vm0, %v628_v33  ;;  %1636 = vmatprep.subr.mxu1 %v1809_v5 }
 0x2af   :  { %1637 = vmatpush3.msra.mxu1 %v702_v34  ;;  %1638 = vmatprep.mubr.msk.f32.mxu1 %vm1810_vm9, %v1809_v5 }
 0x2b0   :  { %1639 = vmatmul.mubr.msk.f32.vlgmr.msra.gmra.mxu1 %vm57_vm0, %v710_v35  ;;  %1324 = vmatprep.subr.mxu0 %v1809_v5 }
 0x2b1   :  { %1031 = vmatprep.mubr.f32.mxu1 %v1809_v5 }
 0x35e   :  { %v527_v36 = vpop.f32.mrf.mxu0 }
 0x35f   :  { %v537_v41 = vadd.f32 %v1515_v40, %v527_v36 }
 0x360   :  { %v1583_v37 = vpop.f32.mrf.mxu0  ;;  %v615_v38 = vpop.f32.mrf.mxu1 }
 0x361   :  { %v619_v42 = vadd.f32 %v615_v38, %v537_v41 }
 0x362   :  { %v1602_v39 = vpop.f32.mrf.mxu1 }
 0x36e   :  { %v697_v43 = vpop.f32.mrf.mxu0 }
 0x36f   :  { %v701_v44 = vadd.f32 %v697_v43, %v619_v42 }
 0x370   :  { %v1621_v45 = vpop.f32.mrf.mxu0  ;;  %v779_v46 = vpop.f32.mrf.mxu1 }
 0x371   :  { %v783_v47 = vadd.f32 %v779_v46, %v701_v44 }
 0x372   :  { %v1640_v48 = vpop.f32.mrf.mxu1 }
 0x373   :  { %v785_v49 = vand.u32 2147483647, %v783_v47  ;;  %v806_v50 = vmul.f32 %v783_v47, %v783_v47  ;;  %v784_v56 = vmax.f32 %v783_v47, 0.0 }
 0x375   :  { %v786_v5 = vsub.f32 0.0, %v785_v49  ;;  %v808_v51 = vsel %vm807_vm10, %v806_v50, 0.0 }
 0x376   :  { %809 = vadd.xlane.f32.xlu0 %v808_v51 }
 0x377   :  { %v787_v52 = vmul.f32 1.442695, %v786_v5 }
 0x379   :  { %1653 = vpow2.f32 %v787_v52 }
 0x386   :  { %v1654_v53 = vpop.eup %1653 }
 0x387   :  { %v789_v54 = vadd.f32 1.0, %v1654_v53 }
 0x389   :  { %1655 = vlog2.f32 %v789_v54 }
 0x396   :  { %v1656_v55 = vpop.eup %1655 }
 0x397   :  { %v791_v57 = vmul.f32 0.6931472, %v1656_v55 }
 0x399   :  { %v2413_v58 = vadd.f32 %v791_v57, %v784_v56 }
 0x39b   :  { %1657 = vrsqrt.f32 %v2413_v58  ;;  %vm796_vm11 = vcmp.eq.f32.partialorder %v2413_v58, inf  ;;  %v799_v62 = vand.u32 2147483648, %v2413_v58  ;;  %vm798_vm12 = vcmp.eq.f32.partialorder %v2413_v58, 0.0 }
 0x3a8   :  { %v1658_v59 = vpop.eup %1657 }
 0x3a9   :  { %v795_v60 = vmul.f32 %v1658_v59, %v2413_v58 }
 0x3ab   :  { %v797_v63 = vsel %vm796_vm11, %v2413_v58, %v795_v60 }
 0x3ac   :  { %v800_v0 = vsel %vm798_vm12, %v799_v62, %v797_v63 }
 0x3ad   :  { %v805_v1 = vmul.f32 %v803_v61, %v800_v0 }
 0x3af   :  { %836 = vrot.lane.b32.xlu1 %v805_v1, %s1812_s7 }
 0x3ff   :  { %v810_v2 = vpop.xlane.xlu0 %809 }
 0x400   :  { %1659 = vrsqrt.f32 %v810_v2  ;;  %vm813_vm13 = vcmp.eq.f32.partialorder %v810_v2, inf  ;;  %v816_v6 = vand.u32 2147483648, %v810_v2  ;;  %vm815_vm14 = vcmp.eq.f32.partialorder %v810_v2, 0.0 }
 0x401   :  { %v826_v14 = vmul.f32 0.16666667, %v810_v2 }
 0x403   :  { %v827_v20 = vadd.f32 1.0, %v826_v14 }
 0x40d   :  { %v1660_v3 = vpop.eup %1659 }
 0x40e   :  { %v812_v4 = vmul.f32 %v1660_v3, %v810_v2  ;;  %v950_v3 = vld [vmem:[%s2754_s8 + $0x8] sm:$0xff] }
 0x40f   :  { %997 = vmatprep.subr.mxu1 %v950_v3 }
 0x410   :  { %v814_v7 = vsel %vm813_vm13, %v810_v2, %v812_v4  ;;  %v949_v4 = vld [vmem:[%s2754_s8] sm:$0xff] }
 0x411   :  { %v817_v8 = vsel %vm815_vm14, %v816_v6, %v814_v7  ;;  %998 = vmatpush1.msra.mxu1 %v949_v4  ;;  %v2452_v6 = vld [vmem:[#allocation4] sm:$0xff]  ;;  %vm963_vm14 = vcmask 64512  }
 0x412   :  { %v818_v9 = vmul.f32 1.442695, %v817_v8  ;;  %v830_v12 = vmax.f32 %v817_v8, 1e-08  ;;  %vm824_vm1 = vcmp.lt.f32.partialorder %v817_v8, 0.0001  ;;  %1127 = vmatprep.subr.mxu1 %v2452_v6 }
 0x414   :  { %1661 = vpow2.f32 %v818_v9 }
 0x421   :  { %v1662_v10 = vpop.eup %1661  ;;  %v837_v11 = vpop.permute.xlu1 %836 }
 0x422   :  { %1663 = vrcp.f32 %v1662_v10  ;;  %915 = vst.msk [vmem:[#allocation13] sm:$0x3] %vm807_vm10, %v837_v11 }
 0x423   :  { %1665 = vrcp.f32 %v830_v12 }
 0x42f   :  { %v1664_v13 = vpop.eup %1663 }
 0x430   :  { %v828_v15 = vsub.f32 %v1662_v10, %v1664_v13  ;;  %v822_v16 = vadd.f32 %v1664_v13, %v1662_v10  ;;  %v1666_v19 = vpop.eup %1665 }
 0x432   :  { %v829_v17 = vmul.f32 0.5, %v828_v15  ;;  %v823_v18 = vmul.f32 0.5, %v822_v16 }
 0x434   :  { %v832_v21 = vmul.f32 %v1666_v19, %v829_v17  ;;  %903 = vst.msk [vmem:[#allocation8] sm:$0x3] %vm895_vm15, %v823_v18  ;;  %v843_v26 = vadd.f32 1.0, %v823_v18 }
 0x436   :  { %v833_v22 = vsel %vm824_vm1, %v827_v20, %v832_v21  ;;  %1667 = vrcp.f32 %v843_v26 }
 0x437   :  { %v2424_v23 = vmul.f32 %v833_v22, %v783_v47 }
 0x439   :  { %v839_v24 = vmul.f32 %v837_v11, %v2424_v23 }
 0x43b   :  { %v840_v25 = vsel %vm807_vm10, %v839_v24, 0.0 }
 0x43c   :  { %841 = vadd.xlane.f32.xlu1 %v840_v25 }
 0x443   :  { %v1668_v27 = vpop.eup %1667 }
 0x4c5   :  { %v842_v28 = vpop.xlane.xlu1 %841 }
 0x4c6   :  { %v845_v29 = vmul.f32 %v1668_v27, %v842_v28  ;;  %909 = vst.msk [vmem:[#allocation11] sm:$0x3] %vm895_vm15, %v842_v28  ;;  %v860_v36 = vmul.f32 %v842_v28, %v842_v28 }
 0x4c8   :  { %v846_v30 = vmul.f32 %v845_v29, %v2424_v23  ;;  %v1105_v29 = vld [vmem:[%s2756_s10 + $0x78] sm:$0xff] }
 0x4ca   :  { %848 = vrot.lane.b32.xlu0 %v846_v30, %s1811_s25  ;;  %v1104_v30 = vld [vmem:[%s2756_s10 + $0x70] sm:$0xff] }
 0x53c   :  { %v849_v31 = vpop.permute.xlu0 %848 }
 0x53d   :  { %v2431_v32 = vadd.f32 %v849_v31, %v805_v1  ;;  %v1103_v31 = vld [vmem:[%s2756_s10 + $0x68] sm:$0xff] }
 0x53f   :  { %v852_v33 = vmul.f32 %v2431_v32, %v2431_v32 }
 0x541   :  { %854 = vrot.lane.b32.xlu1 %v852_v33, %s1812_s7  ;;  %v1102_v33 = vld [vmem:[%s2756_s10 + $0x60] sm:$0xff] }
 0x5b3   :  { %v855_v34 = vpop.permute.xlu1 %854 }
 0x5b4   :  { %v857_v35 = vsel %vm807_vm10, %v855_v34, 0.0  ;;  %v1101_v34 = vld [vmem:[%s2756_s10 + $0x58] sm:$0xff] }
 0x5b5   :  { %858 = vadd.xlane.f32.xlu0 %v857_v35  ;;  %v1100_v35 = vld [vmem:[%s2756_s10 + $0x50] sm:$0xff] }
 0x63e   :  { %v859_v37 = vpop.xlane.xlu0 %858 }
 0x63f   :  { %v861_v38 = vsub.f32 %v859_v37, %v860_v36  ;;  %v1099_v36 = vld [vmem:[%s2756_s10 + $0x48] sm:$0xff]  ;;  %v1098_v37 = vld [vmem:[%s2756_s10 + $0x40] sm:$0xff] }
 0x641   :  { %v862_v39 = vmax.f32 %v861_v38, 0.0  ;;  %v1097_v38 = vld [vmem:[%s2756_s10 + $0x38] sm:$0xff] }
 0x643   :  { %1669 = vrsqrt.f32 %v862_v39  ;;  %vm865_vm4 = vcmp.eq.f32.partialorder %v862_v39, inf  ;;  %v868_v42 = vand.u32 2147483648, %v862_v39  ;;  %vm867_vm7 = vcmp.eq.f32.partialorder %v862_v39, 0.0 }
 0x644   :  { %v877_v49 = vmul.f32 0.16666667, %v862_v39 }
 0x646   :  { %v878_v54 = vadd.f32 1.0, %v877_v49  ;;  %v1112_v49 = vld [vmem:[%s2756_s10 + $0xb0] sm:$0xff] }
 0x650   :  { %v1670_v40 = vpop.eup %1669 }
 0x651   :  { %v864_v41 = vmul.f32 %v1670_v40, %v862_v39  ;;  %v1095_v40 = vld [vmem:[%s2756_s10 + $0x28] sm:$0xff] }
 0x653   :  { %v866_v43 = vsel %vm865_vm4, %v862_v39, %v864_v41  ;;  %v1096_v39 = vld [vmem:[%s2756_s10 + $0x30] sm:$0xff]  ;;  %v1094_v41 = vld [vmem:[%s2756_s10 + $0x20] sm:$0xff] }
 0x654   :  { %v869_v44 = vsel %vm867_vm7, %v868_v42, %v866_v43  ;;  %v1093_v42 = vld [vmem:[%s2756_s10 + $0x18] sm:$0xff]  ;;  %v1092_v43 = vld [vmem:[%s2756_s10 + $0x10] sm:$0xff] }
 0x655   :  { %v870_v45 = vmul.f32 1.442695, %v869_v44  ;;  %v881_v47 = vmax.f32 %v869_v44, 1e-08  ;;  %vm876_vm8 = vcmp.lt.f32.partialorder %v869_v44, 0.0001 }
 0x656   :  { %v1091_v44 = vld [vmem:[%s2756_s10 + $0x8] sm:$0xff] }
 0x657   :  { %1671 = vpow2.f32 %v870_v45  ;;  %v1090_v45 = vld [vmem:[%s2756_s10] sm:$0xff] }
 0x664   :  { %v1672_v46 = vpop.eup %1671 }
 0x665   :  { %1673 = vrcp.f32 %v1672_v46 }
 0x666   :  { %1675 = vrcp.f32 %v881_v47  ;;  %v953_v47 = vlaneseq }
 0x672   :  { %v1674_v48 = vpop.eup %1673 }
 0x673   :  { %v879_v50 = vsub.f32 %v1672_v46, %v1674_v48  ;;  %v874_v5 = vadd.f32 %v1674_v48, %v1672_v46  ;;  %v1676_v52 = vpop.eup %1675  ;;  %v1113_v46 = vld [vmem:[%s2756_s10 + $0xb8] sm:$0xff]  ;;  %v954_v48 = vshrl.u32 %v953_v47, 7  ;;  %v1298_v47 = vld [vmem:[%s2758_s12 + $0x88] sm:$0xff] }
 0x675   :  { %v880_v51 = vmul.f32 0.5, %v879_v50  ;;  %v875_v53 = vmul.f32 0.5, %v874_v5  ;;  %v955_v50 = vsub.s32 0, %v954_v48  ;;  %v951_v5 = vld [vmem:[%s2755_s9] sm:$0x3] }
 0x677   :  { %v883_v55 = vmul.f32 %v1676_v52, %v880_v51  ;;  %v885_v60 = vmul.f32 %v875_v53, %v823_v18  ;;  %v888_v62 = vmul.f32 %v875_v53, %v2424_v23  ;;  %v1111_v51 = vld [vmem:[%s2756_s10 + $0xa8] sm:$0xff]  ;;  %v1110_v52 = vld [vmem:[%s2756_s10 + $0xa0] sm:$0xff]  ;;  %v959_v53 = vsub.s32 1, %v954_v48 }
 0x678   :  { %v1297_v48 = vld [vmem:[%s2758_s12 + $0x80] sm:$0xff] }
 0x679   :  { %v884_v56 = vsel %vm876_vm8, %v878_v54, %v883_v55  ;;  %v956_v54 = vrot.slane %v951_v5, %v955_v50  ;;  %v1109_v55 = vld [vmem:[%s2756_s10 + $0x98] sm:$0xff] }
 0x67a   :  { %v889_v57 = vmul.f32 %v884_v56, %v2431_v32  ;;  %v886_v59 = vmul.f32 %v884_v56, %v842_v28  ;;  %v1108_v56 = vld [vmem:[%s2756_s10 + $0x90] sm:$0xff] }
 0x67c   :  { %891 = vrot.lane.b32.xlu1 %v889_v57, %s1812_s7  ;;  %v887_v61 = vadd.f32 %v886_v59, %v885_v60  ;;  %v960_v57 = vrot.slane %v951_v5, %v959_v53 }
 0x67e   :  { %896 = vst.msk [vmem:[#allocation6] sm:$0x3] %vm895_vm15, %v887_v61  ;;  %v921_v7 = vmax.f32 %v887_v61, 1.0000001 }
 0x680   :  { %v934_v8 = vmul.f32 %v921_v7, %v921_v7 }
 0x682   :  { %v1519_v9 = vadd.f32 -1.0, %v934_v8 }
 0x684   :  { %1677 = vrsqrt.f32 %v1519_v9  ;;  %vm938_vm9 = vcmp.eq.f32.partialorder %v1519_v9, inf  ;;  %v941_v15 = vand.u32 2147483648, %v1519_v9  ;;  %vm940_vm11 = vcmp.eq.f32.partialorder %v1519_v9, 0.0 }
 0x691   :  { %v1678_v10 = vpop.eup %1677 }
 0x692   :  { %v937_v13 = vmul.f32 %v1678_v10, %v1519_v9 }
 0x694   :  { %v939_v14 = vsel %vm938_vm9, %v1519_v9, %v937_v13 }
 0x695   :  { %v942_v16 = vsel %vm940_vm11, %v941_v15, %v939_v14 }
 0x696   :  { %v943_v17 = vadd.f32 %v942_v16, %v921_v7 }
 0x6ee   :  { %v892_v63 = vpop.permute.xlu1 %891 }
 0x6ef   :  { %v2441_v0 = vadd.f32 %v892_v63, %v888_v62  ;;  %v1107_v62 = vld [vmem:[%s2756_s10 + $0x88] sm:$0xff]  ;;  %v1106_v63 = vld [vmem:[%s2756_s10 + $0x80] sm:$0xff] }
 0x6f1   :  { %v922_v1 = vmul.f32 %v2441_v0, %v2441_v0 }
 0x6f3   :  { %v923_v2 = vsel %vm807_vm10, %v922_v1, 0.0 }
 0x6f4   :  { %924 = vadd.xlane.f32.xlu1 %v923_v2 }
 0x77d   :  { %v925_v11 = vpop.xlane.xlu1 %924 }
 0x77e   :  { %v926_v12 = vmax.f32 %v925_v11, 1e-12 }
 0x780   :  { %1679 = vrsqrt.f32 %v926_v12  ;;  %vm929_vm12 = vcmp.eq.f32.partialorder %v926_v12, inf  ;;  %v932_v20 = vand.u32 2147483648, %v926_v12  ;;  %vm931_vm13 = vcmp.eq.f32.partialorder %v926_v12, 0.0 }
 0x781   :  { %1681 = vlog2.f32 %v943_v17 }
 0x78d   :  { %v1680_v18 = vpop.eup %1679 }
 0x78e   :  { %v928_v19 = vmul.f32 %v1680_v18, %v926_v12  ;;  %v1682_v24 = vpop.eup %1681 }
 0x78f   :  { %v945_v25 = vmul.f32 0.6931472, %v1682_v24  ;;  %v1295_v24 = vld [vmem:[%s2758_s12 + $0x70] sm:$0xff] }
 0x790   :  { %v930_v21 = vsel %vm929_vm12, %v926_v12, %v928_v19 }
 0x791   :  { %v933_v22 = vsel %vm931_vm13, %v932_v20, %v930_v21 }
 0x792   :  { %1683 = vrcp.f32 %v933_v22  ;;  %v1296_v22 = vld [vmem:[%s2758_s12 + $0x78] sm:$0xff] }
 0x793   :  { %1325 = vmatpush1.msra.mxu0 %v1296_v22 }
 0x794   :  { %1326 = vmatprep.subr.mxu0 %v2452_v6 }
 0x795   :  { %1327 = vmatpush1.msra.mxu0 %v1295_v24 }
 0x796   :  { %1328 = vmatprep.subr.mxu0 %v2452_v6 }
 0x79f   :  { %v1684_v26 = vpop.eup %1683 }
 0x7a0   :  { %v947_v27 = vmul.f32 %v1684_v26, %v945_v25  ;;  %v1294_v25 = vld [vmem:[%s2758_s12 + $0x68] sm:$0xff]  ;;  %v1293_v26 = vld [vmem:[%s2758_s12 + $0x60] sm:$0xff] }
 0x7a1   :  { %1329 = vmatpush1.msra.mxu0 %v1294_v25 }
 0x7a2   :  { %v948_v28 = vmul.f32 %v947_v27, %v2441_v0  ;;  %1330 = vmatprep.subr.mxu0 %v2452_v6  ;;  %v1292_v27 = vld [vmem:[%s2758_s12 + $0x58] sm:$0xff] }
 0x7a3   :  { %1331 = vmatpush1.msra.mxu0 %v1293_v26 }
 0x7a4   :  { %1520 = vmatmul.mubr.msk.f32.vlgmr.msra.gmra.mxu1 %vm963_vm14, %v948_v28  ;;  %1332 = vmatprep.subr.mxu0 %v2452_v6  ;;  %v1291_v28 = vld [vmem:[%s2758_s12 + $0x50] sm:$0xff] }
 0x7a5   :  { %1128 = vmatpush1.msra.mxu1 %v1105_v29  ;;  %1333 = vmatpush1.msra.mxu0 %v1292_v27  ;;  %v1290_v29 = vld [vmem:[%s2758_s12 + $0x48] sm:$0xff] }
 0x7a6   :  { %1129 = vmatprep.subr.mxu1 %v2452_v6  ;;  %1334 = vmatprep.subr.mxu0 %v2452_v6 }
 0x7a7   :  { %1130 = vmatpush1.msra.mxu1 %v1104_v30  ;;  %1335 = vmatpush1.msra.mxu0 %v1291_v28  ;;  %v1289_v30 = vld [vmem:[%s2758_s12 + $0x40] sm:$0xff] }
 0x7a8   :  { %1131 = vmatprep.subr.mxu1 %v2452_v6  ;;  %1336 = vmatprep.subr.mxu0 %v2452_v6 }
 0x7a9   :  { %1132 = vmatpush1.msra.mxu1 %v1103_v31  ;;  %1337 = vmatpush1.msra.mxu0 %v1290_v29  ;;  %v1288_v31 = vld [vmem:[%s2758_s12 + $0x38] sm:$0xff] }
 0x7aa   :  { %1133 = vmatprep.subr.mxu1 %v2452_v6  ;;  %1338 = vmatprep.subr.mxu0 %v2452_v6 }
 0x7ab   :  { %1134 = vmatpush1.msra.mxu1 %v1102_v33  ;;  %1339 = vmatpush1.msra.mxu0 %v1289_v30  ;;  %v1287_v33 = vld [vmem:[%s2758_s12 + $0x30] sm:$0xff] }
 0x7ac   :  { %1135 = vmatprep.subr.mxu1 %v2452_v6  ;;  %1340 = vmatprep.subr.mxu0 %v2452_v6 }
 0x7ad   :  { %1136 = vmatpush1.msra.mxu1 %v1101_v34  ;;  %1341 = vmatpush1.msra.mxu0 %v1288_v31  ;;  %v1286_v34 = vld [vmem:[%s2758_s12 + $0x28] sm:$0xff] }
 0x7ae   :  { %1137 = vmatprep.subr.mxu1 %v2452_v6  ;;  %1342 = vmatprep.subr.mxu0 %v2452_v6 }
 0x7af   :  { %1138 = vmatpush1.msra.mxu1 %v1100_v35  ;;  %1343 = vmatpush1.msra.mxu0 %v1287_v33  ;;  %v1285_v35 = vld [vmem:[%s2758_s12 + $0x20] sm:$0xff] }
 0x7b0   :  { %1139 = vmatprep.subr.mxu1 %v2452_v6  ;;  %1344 = vmatprep.subr.mxu0 %v2452_v6 }
 0x7b1   :  { %1140 = vmatpush1.msra.mxu1 %v1099_v36  ;;  %1345 = vmatpush1.msra.mxu0 %v1286_v34  ;;  %v1284_v36 = vld [vmem:[%s2758_s12 + $0x18] sm:$0xff] }
 0x7b2   :  { %1141 = vmatprep.subr.mxu1 %v2452_v6  ;;  %1346 = vmatprep.subr.mxu0 %v2452_v6 }
 0x7b3   :  { %1142 = vmatpush1.msra.mxu1 %v1098_v37  ;;  %1347 = vmatpush1.msra.mxu0 %v1285_v35  ;;  %v1283_v37 = vld [vmem:[%s2758_s12 + $0x10] sm:$0xff] }
 0x7b4   :  { %1143 = vmatprep.subr.mxu1 %v2452_v6  ;;  %1348 = vmatprep.subr.mxu0 %v2452_v6 }
 0x7b5   :  { %1144 = vmatpush1.msra.mxu1 %v1097_v38  ;;  %1349 = vmatpush1.msra.mxu0 %v1284_v36  ;;  %v1282_v38 = vld [vmem:[%s2758_s12 + $0x8] sm:$0xff] }
 0x7b6   :  { %1145 = vmatprep.subr.mxu1 %v2452_v6  ;;  %1350 = vmatprep.subr.mxu0 %v2452_v6 }
 0x7b7   :  { %1146 = vmatpush1.msra.mxu1 %v1096_v39  ;;  %1351 = vmatpush1.msra.mxu0 %v1283_v37  ;;  %v1281_v39 = vld [vmem:[%s2758_s12] sm:$0xff] }
 0x7b8   :  { %1147 = vmatprep.subr.mxu1 %v2452_v6  ;;  %1352 = vmatprep.subr.mxu0 %v2452_v6 }
 0x7b9   :  { %1148 = vmatpush1.msra.mxu1 %v1095_v40  ;;  %1353 = vmatpush1.msra.mxu0 %v1282_v38  ;;  %v1304_v40 = vld [vmem:[%s2758_s12 + $0xb8] sm:$0xff] }
 0x7ba   :  { %1149 = vmatprep.subr.mxu1 %v2452_v6  ;;  %1354 = vmatprep.subr.mxu0 %v2452_v6 }
 0x7bb   :  { %1150 = vmatpush1.msra.mxu1 %v1094_v41  ;;  %1355 = vmatpush1.msra.mxu0 %v1281_v39  ;;  %v1303_v41 = vld [vmem:[%s2758_s12 + $0xb0] sm:$0xff] }
 0x7bc   :  { %1151 = vmatprep.subr.mxu1 %v2452_v6  ;;  %1372 = vmatprep.subr.mxu0 %v2452_v6 }
 0x7bd   :  { %1152 = vmatpush1.msra.mxu1 %v1093_v42  ;;  %1373 = vmatpush2.msra.mxu0 %v1304_v40  ;;  %v1302_v42 = vld [vmem:[%s2758_s12 + $0xa8] sm:$0xff] }
 0x7be   :  { %1153 = vmatprep.subr.mxu1 %v2452_v6  ;;  %1374 = vmatprep.subr.mxu0 %v2452_v6 }
 0x7bf   :  { %1154 = vmatpush1.msra.mxu1 %v1092_v43  ;;  %1375 = vmatpush2.msra.mxu0 %v1303_v41  ;;  %v1301_v43 = vld [vmem:[%s2758_s12 + $0xa0] sm:$0xff] }
 0x7c0   :  { %1155 = vmatprep.subr.mxu1 %v2452_v6  ;;  %1376 = vmatprep.subr.mxu0 %v2452_v6 }
 0x7c1   :  { %1156 = vmatpush1.msra.mxu1 %v1091_v44  ;;  %1377 = vmatpush2.msra.mxu0 %v1302_v42  ;;  %v1300_v44 = vld [vmem:[%s2758_s12 + $0x98] sm:$0xff] }
 0x7c2   :  { %1157 = vmatprep.subr.mxu1 %v2452_v6  ;;  %1378 = vmatprep.subr.mxu0 %v2452_v6 }
 0x7c3   :  { %1158 = vmatpush1.msra.mxu1 %v1090_v45  ;;  %1379 = vmatpush2.msra.mxu0 %v1301_v43  ;;  %v1299_v45 = vld [vmem:[%s2758_s12 + $0x90] sm:$0xff]  ;;  %s1814_s12 = smov 121  }
 0x7c4   :  { %1175 = vmatprep.subr.mxu1 %v2452_v6  ;;  %1380 = vmatprep.subr.mxu0 %v2452_v6 }
 0x7c5   :  { %1176 = vmatpush2.msra.mxu1 %v1113_v46  ;;  %1381 = vmatpush2.msra.mxu0 %v1300_v44  ;;  %v1521_v46 = vld [vmem:[%s2757_s11] ss:$0 sm:$0xff]  ;;  %s1813_s11 = smov 1  }
 0x7c6   :  { %1177 = vmatprep.subr.mxu1 %v2452_v6  ;;  %1382 = vmatprep.subr.mxu0 %v2452_v6 }
 0x7c7   :  { %1178 = vmatpush2.msra.mxu1 %v1112_v49  ;;  %1383 = vmatpush2.msra.mxu0 %v1299_v45 }
 0x7c8   :  { %1179 = vmatprep.subr.mxu1 %v2452_v6  ;;  %1384 = vmatprep.subr.mxu0 %v2452_v6 }
 0x7c9   :  { %1180 = vmatpush2.msra.mxu1 %v1111_v51  ;;  %1385 = vmatpush2.msra.mxu0 %v1298_v47 }
 0x7ca   :  { %1181 = vmatprep.subr.mxu1 %v2452_v6  ;;  %1386 = vmatprep.subr.mxu0 %v2452_v6 }
 0x7cb   :  { %1182 = vmatpush2.msra.mxu1 %v1110_v52  ;;  %1387 = vmatpush2.msra.mxu0 %v1297_v48 }
 0x7cc   :  { %1183 = vmatprep.subr.mxu1 %v2452_v6 }
 0x7cd   :  { %1184 = vmatpush2.msra.mxu1 %v1109_v55 }
 0x7ce   :  { %1185 = vmatprep.subr.mxu1 %v2452_v6 }
 0x7cf   :  { %1186 = vmatpush2.msra.mxu1 %v1108_v56 }
 0x7d0   :  { %1187 = vmatprep.subr.mxu1 %v2452_v6 }
 0x7d1   :  { %1188 = vmatpush2.msra.mxu1 %v1107_v62 }
 0x7d2   :  { %1189 = vmatprep.subr.mxu1 %v2452_v6 }
 0x7d3   :  { %1190 = vmatpush2.msra.mxu1 %v1106_v63 }
 0x864   :  { %v1033_v59 = vpop.f32.mrf.mxu1 }
 0x865   :  { %v1034_v60 = vadd.f32 %v1033_v59, %v956_v54 }
 0x866   :  { %v1035_v61 = vpop.f32.mrf.mxu1 }
 0x867   :  { %v1038_v1 = vmax.f32 %v1034_v60, 0.0  ;;  %v1036_v2 = vadd.f32 %v1035_v61, %v960_v57 }
 0x869   :  { %v1056_v3 = vrot.slane %v1038_v1, 4  ;;  %v1039_v4 = vmax.f32 %v1036_v2, 0.0  ;;  %1045 = vrot.lane.b32.xlu1 %v1038_v1, %s1808_s22  ;;  %v1049_v7 = vrot.slane %v1038_v1, 6  ;;  %v1059_v11 = vrot.slane %v1038_v1, 2 }
 0x86b   :  { %1058 = vst.msk [vmem:[#allocation4] sm:$0x30] %vm102_vm6, %v1056_v3  ;;  %v1079_v8 = vrot.slane %v1039_v4, 4  ;;  %1052 = vrot.lane.b32.xlu0 %v1049_v7, %s1808_s22  ;;  %v1072_v9 = vrot.slane %v1039_v4, 6  ;;  %v1065_v10 = vrot.slane %v1039_v4, 2 }
 0x86c   :  { %1051 = vst.msk [vmem:[#allocation4] sm:$0xc] %vm75_vm3, %v1049_v7 }
 0x86d   :  { %1081 = vst.msk [vmem:[#allocation4 + $0x10] sm:$0x30] %vm102_vm6, %v1079_v8 }
 0x86e   :  { %1074 = vst.msk [vmem:[#allocation4 + $0x10] sm:$0xc] %vm75_vm3, %v1072_v9 }
 0x86f   :  { %1067 = vst.msk [vmem:[#allocation4 + $0x8] sm:$0xc0] %vm113_vm2, %v1065_v10  ;;  %1060 = vrot.lane.b32.xlu0 %v1059_v11, %s1808_s22 }
 0x873   :  { %1068 = vrot.lane.b32.xlu0 %v1039_v4, %s1808_s22 }
 0x877   :  { %1075 = vrot.lane.b32.xlu0 %v1072_v9, %s1808_s22 }
 0x87b   :  { %1082 = vrot.lane.b32.xlu0 %v1065_v10, %s1808_s22 }
 0x8db   :  { %v1046_v12 = vpop.permute.xlu1 %1045 }
 0x8dc   :  { %1048 = vst.msk [vmem:[#allocation4] sm:$0x3] %vm66_vm5, %v1046_v12 }
 0x8dd   :  { %v1053_v13 = vpop.permute.xlu0 %1052 }
 0x8de   :  { %1055 = vst.msk [vmem:[#allocation4 + $0x8] sm:$0xc] %vm75_vm3, %v1053_v13 }
 0x8e1   :  { %v1061_v14 = vpop.permute.xlu0 %1060 }
 0x8e2   :  { %1063 = vst.msk [vmem:[#allocation4] sm:$0xc0] %vm113_vm2, %v1061_v14 }
 0x8e5   :  { %v1069_v15 = vpop.permute.xlu0 %1068  ;;  %v1087_v16 = vld [vmem:[#allocation4 + $0x8] sm:$0xff] }
 0x8e6   :  { %1071 = vst.msk [vmem:[#allocation4 + $0x10] sm:$0x3] %vm66_vm5, %v1069_v15  ;;  %1522 = vmatprep.mubr.msk.f32.mxu1 %vm57_vm0, %v1087_v16 }
 0x8e9   :  { %v1076_v17 = vpop.permute.xlu0 %1075  ;;  %v1086_v18 = vld [vmem:[#allocation4] sm:$0xff] }
 0x8ea   :  { %1078 = vst.msk [vmem:[#allocation4 + $0x18] sm:$0xc] %vm75_vm3, %v1076_v17  ;;  %1192 = vmatmul.mubr.f32.vlgmr.msra.gmra.mxu1 %v1086_v18 }
 0x8ed   :  { %v1083_v19 = vpop.permute.xlu0 %1082 }
 0x8ee   :  { %1085 = vst.msk [vmem:[#allocation4 + $0x10] sm:$0xc0] %vm113_vm2, %v1083_v19 }
 0x8f1   :  { %v1089_v20 = vld [vmem:[#allocation4 + $0x18] sm:$0xff] }
 0x8f2   :  { %1523 = vmatprep.mubr.msk.f32.mxu1 %vm57_vm0, %v1089_v20 }
 0x8f5   :  { %v1088_v21 = vld [vmem:[#allocation4 + $0x10] sm:$0xff] }
 0x8f6   :  { %1197 = vmatmul.mubr.f32.gmra.mxu1 %v1088_v21 }
 0x9aa   :  { %v1193_v49 = vpop.f32.mrf.mxu1 }
 0x9ab   :  { %v1194_v50 = vadd.f32 %v1521_v46, %v1193_v49 }
 0x9ac   :  { %v1195_v5 = vpop.f32.mrf.mxu1 }
 0x9ad   :  { %v1202_v51 = vmax.f32 %v1194_v50, 0.0 }
 0x9af   :  { %1220 = vst.msk [vmem:[#allocation5 + $0x8] sm:$0xc] %vm75_vm3, %v1202_v51  ;;  %1213 = vrot.lane.b32.xlu1 %v1202_v51, %s1808_s22  ;;  %v1217_v52 = vrot.slane %v1202_v51, 6  ;;  %v1225_v53 = vrot.slane %v1202_v51, 4  ;;  %v1233_v54 = vrot.slane %v1202_v51, 2 }
 0x9b0   :  { %1241 = vst.msk [vmem:[#allocation5 + $0x10] sm:$0xc0] %vm113_vm2, %v1202_v51 }
 0x9b1   :  { %1221 = vrot.lane.b32.xlu0 %v1217_v52, %s1808_s22  ;;  %1228 = vst.msk [vmem:[#allocation5 + $0x8] sm:$0xc0] %vm113_vm2, %v1217_v52  ;;  %1227 = vst.msk [vmem:[#allocation5] sm:$0xc0] %vm113_vm2, %v1225_v53 }
 0x9b2   :  { %1219 = vst.msk [vmem:[#allocation5] sm:$0xc] %vm75_vm3, %v1217_v52  ;;  %1236 = vst.msk [vmem:[#allocation5 + $0x18] sm:$0xc] %vm75_vm3, %v1225_v53 }
 0x9b3   :  { %1235 = vst.msk [vmem:[#allocation5 + $0x10] sm:$0xc] %vm75_vm3, %v1233_v54  ;;  %1229 = vrot.lane.b32.xlu1 %v1225_v53, %s1808_s22 }
 0x9b5   :  { %1237 = vrot.lane.b32.xlu0 %v1233_v54, %s1808_s22 }
 0x9b6   :  { %v1198_v6 = vpop.f32.mrf.mxu1 }
 0x9b7   :  { %v1199_v55 = vadd.f32 %v1521_v46, %v1198_v6 }
 0x9b8   :  { %v1200_v56 = vpop.f32.mrf.mxu1  ;;  %v1274_v57 = vld [vmem:[#allocation5 + $0x8] sm:$0xff] }
 0x9b9   :  { %v1203_v59 = vmax.f32 %v1199_v55, 0.0  ;;  %1525 = vmatprep.mubr.msk.f32.mxu0 %vm57_vm0, %v1274_v57 }
 0x9bb   :  { %1253 = vst.msk [vmem:[#allocation5 + $0x28] sm:$0xc] %vm75_vm3, %v1203_v59  ;;  %1246 = vrot.lane.b32.xlu1 %v1203_v59, %s1808_s22  ;;  %v1250_v60 = vrot.slane %v1203_v59, 6  ;;  %v1258_v61 = vrot.slane %v1203_v59, 4  ;;  %v1243_v62 = vrot.slane %v1203_v59, 2 }
 0x9bc   :  { %1272 = vst.msk [vmem:[#allocation5 + $0x30] sm:$0xc0] %vm113_vm2, %v1203_v59 }
 0x9bd   :  { %1261 = vst.msk [vmem:[#allocation5 + $0x28] sm:$0xc0] %vm113_vm2, %v1250_v60  ;;  %1254 = vrot.lane.b32.xlu0 %v1250_v60, %s1808_s22  ;;  %1260 = vst.msk [vmem:[#allocation5 + $0x20] sm:$0xc0] %vm113_vm2, %v1258_v61 }
 0x9be   :  { %1252 = vst.msk [vmem:[#allocation5 + $0x20] sm:$0xc] %vm75_vm3, %v1250_v60  ;;  %1267 = vst.msk [vmem:[#allocation5 + $0x38] sm:$0xc] %vm75_vm3, %v1258_v61 }
 0x9bf   :  { %1245 = vst.msk [vmem:[#allocation5 + $0x18] sm:$0xc0] %vm113_vm2, %v1243_v62  ;;  %1262 = vrot.lane.b32.xlu1 %v1258_v61, %s1808_s22  ;;  %vm901_vm2 = vcmask 66568  }
 0x9c0   :  { %1266 = vst.msk [vmem:[#allocation5 + $0x30] sm:$0xc] %vm75_vm3, %v1243_v62 }
 0x9c1   :  { %1268 = vrot.lane.b32.xlu0 %v1243_v62, %s1808_s22  ;;  %s1815_s22 = smov [#allocation8]  }
 0x9c3   :  { %905 = vrot.lane.b32.xlu1 %v2424_v23, %s1813_s11 }
 0x9c4   :  { %v1278_v7 = vld [vmem:[#allocation5 + $0x28] sm:$0xff] }
 0x9c5   :  { %911 = vrot.lane.b32.xlu0 %v2431_v32, %s1814_s12  ;;  %v1280_v13 = vld [vmem:[#allocation5 + $0x38] sm:$0xff] }
 0x9c6   :  { %v1276_v32 = vld [vmem:[#allocation5 + $0x18] sm:$0xff] }
 0x9c7   :  { %898 = vrot.lane.b32.xlu1 %v2441_v0, %s1813_s11 }
 0x9c9   :  { %917 = vrot.lane.b32.xlu0 %v2413_v58, %s1812_s7  ;;  %s1455_s7 = sshll.u32 %s1815_s22, 4  ;;  %s1456_s7 = int_to_ptr.vmem [resolvable:$true] %s1455_s7 }
 0x9ca   :  { %s1702_s23 = scalar_lea.vmem %s1456_s7, 32  ;;  %p1707_p1 = scmp.lt.s32.totalorder %s1456_s7, %s1456_s7 }
 0x9cb   :  { %p1703_p0 = scmp.ne.s32.totalorder %s1456_s7, %s1702_s23  ;;  %p1708_p2 = scmp.lt.s32.totalorder %s1702_s23, %s1702_s23 }
 0x9cd   :  { %p1709_p3 = por %p1708_p2, %p1707_p1 }
 0x9cf   :  { %p1710_p4 = pnand %p1709_p3, %p1703_p0 }
 0xa21   :  { %v1214_v63 = vpop.permute.xlu1 %1213 }
 0xa22   :  { %1216 = vst.msk [vmem:[#allocation5] sm:$0x3] %vm66_vm5, %v1214_v63 }
 0xa23   :  { %v1222_v1 = vpop.permute.xlu0 %1221 }
 0xa24   :  { %1224 = vst.msk [vmem:[#allocation5] sm:$0x30] %vm102_vm6, %v1222_v1 }
 0xa25   :  { %v1230_v2 = vpop.permute.xlu1 %1229 }
 0xa26   :  { %1232 = vst.msk [vmem:[#allocation5 + $0x10] sm:$0x3] %vm66_vm5, %v1230_v2 }
 0xa27   :  { %v1238_v3 = vpop.permute.xlu0 %1237 }
 0xa28   :  { %1240 = vst.msk [vmem:[#allocation5 + $0x10] sm:$0x30] %vm102_vm6, %v1238_v3 }
 0xa2b   :  { %v1273_v23 = vld [vmem:[#allocation5] sm:$0xff] }
 0xa2c   :  { %1389 = vmatmul.mubr.f32.vlgmr.msra.gmra.mxu0 %v1273_v23 }
 0xa2d   :  { %v1247_v4 = vpop.permute.xlu1 %1246  ;;  %1526 = vmatprep.mubr.msk.f32.mxu0 %vm57_vm0, %v1276_v32 }
 0xa2e   :  { %1249 = vst.msk [vmem:[#allocation5 + $0x20] sm:$0x3] %vm66_vm5, %v1247_v4 }
 0xa2f   :  { %v1255_v58 = vpop.permute.xlu0 %1254  ;;  %v1275_v0 = vld [vmem:[#allocation5 + $0x10] sm:$0xff] }
 0xa30   :  { %1257 = vst.msk [vmem:[#allocation5 + $0x20] sm:$0x30] %vm102_vm6, %v1255_v58  ;;  %1394 = vmatmul.mubr.f32.gmra.mxu0 %v1275_v0 }
 0xa31   :  { %v1263_v8 = vpop.permute.xlu1 %1262  ;;  %1527 = vmatprep.mubr.msk.f32.mxu0 %vm57_vm0, %v1278_v7 }
 0xa32   :  { %1265 = vst.msk [vmem:[#allocation5 + $0x30] sm:$0x3] %vm66_vm5, %v1263_v8 }
 0xa33   :  { %v1269_v9 = vpop.permute.xlu0 %1268 }
 0xa34   :  { %1271 = vst.msk [vmem:[#allocation5 + $0x30] sm:$0x30] %vm102_vm6, %v1269_v9 }
 0xa35   :  { %v906_v10 = vpop.permute.xlu1 %905 }
 0xa36   :  { %908 = vst.msk [vmem:[#allocation8] sm:$0x3] %vm901_vm2, %v906_v10 }
 0xa37   :  { %v912_v11 = vpop.permute.xlu0 %911  ;;  %v1277_v12 = vld [vmem:[#allocation5 + $0x20] sm:$0xff] }
 0xa38   :  { %1399 = vmatmul.mubr.f32.gmra.mxu0 %v1277_v12  ;;  %914 = vst.msk [vmem:[#allocation11] sm:$0x3] %vm901_vm2, %v912_v11 }
 0xa39   :  { %v899_v14 = vpop.permute.xlu1 %898  ;;  %1528 = vmatprep.mubr.msk.f32.mxu0 %vm57_vm0, %v1280_v13 }
 0xa3a   :  { %902 = vst.msk [vmem:[#allocation6] sm:$0x3] %vm901_vm2, %v899_v14 }
 0xa3b   :  { %v918_v15 = vpop.permute.xlu0 %917  ;;  %v1279_v16 = vld [vmem:[#allocation5 + $0x30] sm:$0xff] }
 0xa3c   :  { %920 = vst.msk [vmem:[#allocation10] sm:$0x3] %vm807_vm10, %v918_v15  ;;  %1404 = vmatmul.mubr.f32.gmra.mxu0 %v1279_v16 }
 0xa3d   :  { %1713 = shalt.err (!%p1710_p4)
}
 0xa3e   :  { %1458 = dma.vmem_to_hbm [thread:$0]  %s1456_s7, 32, %s2762_s16, [#allocation9]  }
 0xa3f   :  { %s1722_s27 = scalar_lea.vmem %s1476_s4, 32  ;;  %p1727_p6 = scmp.lt.s32.totalorder %s1476_s4, %s1476_s4 }
 0xa40   :  { %p1723_p5 = scmp.ne.s32.totalorder %s1476_s4, %s1722_s27  ;;  %p1728_p7 = scmp.lt.s32.totalorder %s1722_s27, %s1722_s27 }
 0xa42   :  { %p1729_p8 = por %p1728_p7, %p1727_p6 }
 0xa44   :  { %p1730_p9 = pnand %p1729_p8, %p1723_p5 }
 0xa46   :  { %1733 = shalt.err (!%p1730_p9)
}
 0xa47   :  { %1478 = dma.vmem_to_hbm [thread:$0]  %s1476_s4, 32, %s2764_s18, [#allocation12]  }
 0xa48   :  { %s1817_s26 = smov [#allocation6]   ;;  %s1818_s10 = smov [#allocation10]  }
 0xa49   :  { %s1445_s6 = sshll.u32 %s1817_s26, 4  ;;  %s1465_s28 = sshll.u32 %s1818_s10, 4  ;;  %s1446_s6 = int_to_ptr.vmem [resolvable:$true] %s1445_s6  ;;  %s1466_s28 = int_to_ptr.vmem [resolvable:$true] %s1465_s28 }
 0xa4a   :  { %s1742_s25 = scalar_lea.vmem %s1446_s6, 32  ;;  %p1747_p11 = scmp.lt.s32.totalorder %s1446_s6, %s1446_s6 }
 0xa4b   :  { %p1743_p10 = scmp.ne.s32.totalorder %s1446_s6, %s1742_s25  ;;  %p1748_p12 = scmp.lt.s32.totalorder %s1742_s25, %s1742_s25 }
 0xa4d   :  { %p1749_p13 = por %p1748_p12, %p1747_p11 }
 0xa4f   :  { %p1750_p0 = pnand %p1749_p13, %p1743_p10 }
 0xa51   :  { %1753 = shalt.err (!%p1750_p0)
}
 0xa52   :  { %1448 = dma.vmem_to_hbm [thread:$0]  %s1446_s6, 32, %s2761_s15, [#allocation7]  }
 0xa53   :  { %s1762_s0 = scalar_lea.vmem %s1466_s28, 32  ;;  %p1767_p2 = scmp.lt.s32.totalorder %s1466_s28, %s1466_s28 }
 0xa54   :  { %p1763_p1 = scmp.ne.s32.totalorder %s1466_s28, %s1762_s0  ;;  %p1768_p3 = scmp.lt.s32.totalorder %s1762_s0, %s1762_s0 }
 0xa56   :  { %p1769_p4 = por %p1768_p3, %p1767_p2 }
 0xa58   :  { %p1770_p5 = pnand %p1769_p4, %p1763_p1 }
 0xa5a   :  { %1773 = shalt.err (!%p1770_p5)
}
 0xa5b   :  { %1468 = dma.vmem_to_hbm [thread:$0]  %s1466_s28, 32, %s2763_s17, [#allocation9]  }
 0xa5c   :  { %s1819_s8 = smov [#allocation13]  }
 0xa5d   :  { %s1485_s5 = sshll.u32 %s1819_s8, 4  ;;  %s1486_s5 = int_to_ptr.vmem [resolvable:$true] %s1485_s5 }
 0xa5e   :  { %s1782_s21 = scalar_lea.vmem %s1486_s5, 32  ;;  %p1787_p7 = scmp.lt.s32.totalorder %s1486_s5, %s1486_s5 }
 0xa5f   :  { %p1783_p6 = scmp.ne.s32.totalorder %s1486_s5, %s1782_s21  ;;  %p1788_p8 = scmp.lt.s32.totalorder %s1782_s21, %s1782_s21 }
 0xa61   :  { %p1789_p9 = por %p1788_p8, %p1787_p7 }
 0xa63   :  { %p1790_p10 = pnand %p1789_p9, %p1783_p6 }
 0xa65   :  { %1793 = shalt.err (!%p1790_p10)
}
 0xa66   :  { %1488 = dma.vmem_to_hbm [thread:$0]  %s1486_s5, 32, %s2765_s19, [#allocation12]   ;;  %v1524_v17 = vld [vmem:[%s2759_s13] ss:$0 sm:$0xff] }
 0xaec   :  { %v1390_v18 = vpop.f32.mrf.mxu0 }
 0xaed   :  { %v1391_v19 = vadd.f32 %v1524_v17, %v1390_v18 }
 0xaee   :  { %v1392_v20 = vpop.f32.mrf.mxu0 }
 0xaef   :  { %v1409_v21 = vsub.f32 0.0, %v1391_v19 }
 0xaf0   :  { %v1395_v22 = vpop.f32.mrf.mxu0 }
 0xaf1   :  { %v1413_v24 = vmul.f32 1.442695, %v1409_v21  ;;  %v1396_v25 = vadd.f32 %v1524_v17, %v1395_v22 }
 0xaf2   :  { %v1397_v26 = vpop.f32.mrf.mxu0 }
 0xaf3   :  { %1685 = vpow2.f32 %v1413_v24  ;;  %v1410_v27 = vsub.f32 0.0, %v1396_v25 }
 0xaf5   :  { %v1415_v28 = vmul.f32 1.442695, %v1410_v27 }
 0xaf7   :  { %1687 = vpow2.f32 %v1415_v28 }
 0xaf8   :  { %v1400_v29 = vpop.f32.mrf.mxu0 }
 0xaf9   :  { %v1401_v30 = vadd.f32 %v1524_v17, %v1400_v29 }
 0xafa   :  { %v1402_v31 = vpop.f32.mrf.mxu0 }
 0xafb   :  { %v1411_v33 = vsub.f32 0.0, %v1401_v30 }
 0xafc   :  { %v1405_v34 = vpop.f32.mrf.mxu0 }
 0xafd   :  { %v1417_v35 = vmul.f32 1.442695, %v1411_v33  ;;  %v1406_v36 = vadd.f32 %v1524_v17, %v1405_v34 }
 0xafe   :  { %v1407_v37 = vpop.f32.mrf.mxu0 }
 0xaff   :  { %1689 = vpow2.f32 %v1417_v35  ;;  %v1412_v38 = vsub.f32 0.0, %v1406_v36 }
 0xb00   :  { %v1686_v39 = vpop.eup %1685 }
 0xb01   :  { %v1421_v40 = vadd.f32 1.0, %v1686_v39  ;;  %v1419_v41 = vmul.f32 1.442695, %v1412_v38 }
 0xb03   :  { %1691 = vrcp.f32 %v1421_v40 }
 0xb04   :  { %v1688_v42 = vpop.eup %1687  ;;  %1693 = vpow2.f32 %v1419_v41 }
 0xb05   :  { %v1422_v43 = vadd.f32 1.0, %v1688_v42 }
 0xb07   :  { %1695 = vrcp.f32 %v1422_v43 }
 0xb0c   :  { %v1690_v44 = vpop.eup %1689 }
 0xb0d   :  { %v1423_v45 = vadd.f32 1.0, %v1690_v44 }
 0xb0f   :  { %1697 = vrcp.f32 %v1423_v45 }
 0xb10   :  { %v1692_v46 = vpop.eup %1691 }
 0xb11   :  { %v1694_v47 = vpop.eup %1693  ;;  %1433 = vst.msk [vmem:[%s2760_s14] sm:$0xff] %vm57_vm0, %v1692_v46 }
 0xb12   :  { %v1424_v48 = vadd.f32 1.0, %v1694_v47 }
 0xb14   :  { %v1696_v49 = vpop.eup %1695  ;;  %1699 = vrcp.f32 %v1424_v48 }
 0xb15   :  { %1434 = vst.msk [vmem:[%s2760_s14 + $0x8] sm:$0xff] %vm57_vm0, %v1696_v49 }
 0xb1c   :  { %v1698_v50 = vpop.eup %1697 }
 0xb1d   :  { %1435 = vst.msk [vmem:[%s2760_s14 + $0x10] sm:$0xff] %vm57_vm0, %v1698_v50 }
 0xb21   :  { %v1700_v5 = vpop.eup %1699 }
 0xb22   :  { %1436 = vst.msk [vmem:[%s2760_s14 + $0x18] sm:$0xff] %vm57_vm0, %v1700_v5 }
 0xb23   :  { %1802 = dma.done.wait [#allocation7], 32  }
 0xb24   :  { %1803 = vsyncadd [#allocation7], 4294967264 }
 0xb25   :  { %1804 = dma.done.wait [#allocation9], 64  }
 0xb26   :  { %1805 = vsyncadd [#allocation9], 4294967232 }
 0xb27   :  { %1806 = dma.done.wait [#allocation12], 64  }
 0xb28   :  { %1807 = vsyncadd [#allocation12], 4294967232 }
 0xb29   :  { %1506 = vsyncpa [#allocation7], 1 }
 0xb2a   :  { %1507 = vsyncpa [#allocation9], 1 }
 0xb2b   :  { %1508 = vsyncpa [#allocation12], 1 }

</bundles_post_ra>
